<compile_context>
chip_gen: v6e
topology: v6e:2x2x1
jax: 0.10.0
libtpu: 0.0.40
codegen_flags: <defaults>
</compile_context>

<pallas_src>
import jax
import jax.numpy as jnp
from jax.experimental import pallas as pl
from jax.experimental.pallas import tpu as pltpu

INPUT_SIZE = 784
HIDDEN = (128, 64)
OUTPUT_SIZE = 10
HP = 128            # hidden / logit lanes padded to 128 inside the kernel (lane-dense)
NEG_INF = -1e30     # finite "-inf" for masking padded logit lanes (z stays f32)


def _round_up(n, m):
    return ((n + m - 1) // m) * m


def _cdiv(a, b):
    return (a + b - 1) // b


def mlp_logsoftmax_kernel(x_ref, w1_ref, b1_ref, w2_ref, b2_ref, w3_ref, b3_ref, o_ref):
    """Whole-network forward for one batch tile: 3 matmuls + ReLU + masked log-softmax."""
    cd = w1_ref.dtype                                   # MXU compute dtype (bf16)

    x = x_ref[...].astype(cd)                           # (TB, 784): in-kernel f32->bf16 cast
    h1 = jnp.dot(x, w1_ref[...], preferred_element_type=jnp.float32) + b1_ref[...]
    h1 = jnp.maximum(h1, 0.0)                           # (TB, 128) f32

    h2 = jnp.dot(h1.astype(cd), w2_ref[...], preferred_element_type=jnp.float32) + b2_ref[...]
    h2 = jnp.maximum(h2, 0.0)                           # (TB, 128) f32; lanes >= 64 are exactly 0

    z = jnp.dot(h2.astype(cd), w3_ref[...], preferred_element_type=jnp.float32) + b3_ref[...]  # (TB, 128)

    # Mask padded logit lanes (cols >= 10) so they don't corrupt the log-sum-exp.
    lane = jax.lax.broadcasted_iota(jnp.int32, z.shape, 1)
    z = jnp.where(lane < OUTPUT_SIZE, z, NEG_INF)

    # Numerically-stable log-softmax along dim=1 (reductions over the 128-lane z).
    m = jnp.max(z, axis=-1, keepdims=True)
    shifted = z - m
    lse = jnp.log(jnp.sum(jnp.exp(shifted), axis=-1, keepdims=True))

    # Store only the 10 real classes -- output side HBM traffic is 40 B/row.
    o_ref[...] = (shifted - lse)[:, :OUTPUT_SIZE]


def prepare_params(params, compute_dtype=jnp.bfloat16):
    """One-time pad + cast of the (tiny) weights; call once, reuse across forwards."""
    w1 = params["w1"].astype(compute_dtype)                                   # (784, 128)
    b1 = params["b1"].reshape(1, -1).astype(jnp.float32)                      # (1, 128)
    w2 = jnp.pad(params["w2"].astype(compute_dtype),
                 ((0, 0), (0, HP - HIDDEN[1])))                               # (128, 128)
    b2 = jnp.pad(params["b2"].reshape(1, -1).astype(jnp.float32),
                 ((0, 0), (0, HP - HIDDEN[1])))                               # (1, 128)
    w3 = jnp.pad(params["w3"].astype(compute_dtype),
                 ((0, HP - HIDDEN[1]), (0, HP - OUTPUT_SIZE)))                # (128, 128)
    b3 = jnp.pad(params["b3"].reshape(1, -1).astype(jnp.float32),
                 ((0, 0), (0, HP - OUTPUT_SIZE)))                             # (1, 128)
    return {"w1": w1, "b1": b1, "w2": w2, "b2": b2, "w3": w3, "b3": b3}


def net_forward(x, prepared, *, batch_tile=2048):
    """x: (B, 784) float32 (or bf16). prepared: output of prepare_params.
    Returns (B, 10) float32 log-probs."""
    B, D = x.shape
    assert D == INPUT_SIZE
    assert batch_tile % 8 == 0, "batch_tile must be a multiple of 8 (sublanes)"

    if B < 8:
        # Degenerate tiny batch: pad rows up to one sublane group (negligible bytes).
        xp = jnp.pad(x, ((0, 8 - B), (0, 0)))
        return net_forward(xp, prepared, batch_tile=batch_tile)[:B]

    # Tile selection: biggest tile (amortizes the ~600-cycle per-step overhead), but keep
    # >= 2 grid steps whenever possible so dimension_semantics=("parallel",) can shard
    # batch tiles across v7x's two TensorCores.
    tile = min(batch_tile, _round_up(B, 8))
    if tile == _round_up(B, 8) and B > 8:
        tile = _round_up(_cdiv(B, 2), 8)
    grid = (_cdiv(B, tile),)

    # Weights/biases: constant block index -> fetched once, VMEM-resident across the grid.
    const_spec = lambda arr: pl.BlockSpec(arr.shape, lambda i: (0, 0))

    out = pl.pallas_call(
        mlp_logsoftmax_kernel,
        out_shape=jax.ShapeDtypeStruct((B, OUTPUT_SIZE), jnp.float32),
        grid=grid,
        in_specs=[
            # x tile is the only per-step stream; last dim == full array dim (784) is
            # legal, so no wrapper pad/cast pass and no K-padding.
            pl.BlockSpec((tile, INPUT_SIZE), lambda i: (i, 0)),
            const_spec(prepared["w1"]), const_spec(prepared["b1"]),
            const_spec(prepared["w2"]), const_spec(prepared["b2"]),
            const_spec(prepared["w3"]), const_spec(prepared["b3"]),
        ],
        # Unpadded (tile, 10) output block; Pallas masks the partial last block's writes.
        out_specs=pl.BlockSpec((tile, OUTPUT_SIZE), lambda i: (i, 0)),
        compiler_params=pltpu.CompilerParams(
            dimension_semantics=("parallel",),      # batch tiles shard across TCs (v7x)
            vmem_limit_bytes=48 * 1024 * 1024,      # covers 2048-row f32 x tiles, 2-deep
        ),
    )(x, prepared["w1"], prepared["b1"], prepared["w2"], prepared["b2"],
      prepared["w3"], prepared["b3"])
    return out


def init_params(key):
    """PyTorch nn.Linear default init: U(-1/sqrt(fan_in), +1/sqrt(fan_in)).
    Weights stored as (in_features, out_features); biases as (1, out_features)."""
    def linear(key, fan_in, fan_out):
        kw, kb = jax.random.split(key)
        bound = 1.0 / jnp.sqrt(jnp.float32(fan_in))
        w = jax.random.uniform(kw, (fan_in, fan_out), jnp.float32, -bound, bound)
        b = jax.random.uniform(kb, (1, fan_out), jnp.float32, -bound, bound)
        return w, b

    k1, k2, k3 = jax.random.split(key, 3)
    w1, b1 = linear(k1, INPUT_SIZE, HIDDEN[0])
    w2, b2 = linear(k2, HIDDEN[0], HIDDEN[1])
    w3, b3 = linear(k3, HIDDEN[1], OUTPUT_SIZE)
    return {"w1": w1, "b1": b1, "w2": w2, "b2": b2, "w3": w3, "b3": b3}


def reference_forward(x, params, compute_dtype=jnp.float32):
    """Pure-JAX reference. compute_dtype=bf16 mirrors the kernel's matmul precision."""
    cd = compute_dtype
    h1 = jnp.maximum(jnp.dot(x.astype(cd), params["w1"].astype(cd),
                             preferred_element_type=jnp.float32) + params["b1"], 0.0)
    h2 = jnp.maximum(jnp.dot(h1.astype(cd), params["w2"].astype(cd),
                             preferred_element_type=jnp.float32) + params["b2"], 0.0)
    z = jnp.dot(h2.astype(cd), params["w3"].astype(cd),
                preferred_element_type=jnp.float32) + params["b3"]
    return jax.nn.log_softmax(z, axis=1)


if __name__ == "__main__":
    key = jax.random.PRNGKey(0)
    kp, kx = jax.random.split(key)
    params = init_params(kp)
    prepared = prepare_params(params)   # one-time pad + cast (hoisted out of per-call path)

    # Modest batch; tile auto-splits to 128 rows -> 2 grid steps (exercises the pipeline).
    B = 256
    x = jax.random.normal(kx, (B, INPUT_SIZE), jnp.float32)

    out = jax.block_until_ready(net_forward(x, prepared))
    assert out.shape == (B, OUTPUT_SIZE)

    # Matching-precision reference (same bf16 matmuls, f32 accumulation).
    ref_bf16 = reference_forward(x, params, compute_dtype=jnp.bfloat16)
    assert jnp.allclose(out, ref_bf16, atol=2e-3, rtol=2e-3), "mismatch vs bf16 reference"

    # Sanity vs full-f32 reference (bounded by bf16 matmul rounding).
    ref_f32 = reference_forward(x, params, compute_dtype=jnp.float32)
    assert float(jnp.max(jnp.abs(out - ref_f32))) < 5e-2, "too far from f32 reference"

    # Rows are valid log-probabilities.
    assert jnp.allclose(jnp.sum(jnp.exp(out), axis=1), 1.0, atol=1e-3)

    # Ragged batch (not a multiple of 8 / of the tile): exercises Pallas' masked partial
    # last block on both the x read and the (tile, 10) write -- no wrapper padding.
    out_r = jax.block_until_ready(net_forward(x[:12], prepared))
    assert out_r.shape == (12, OUTPUT_SIZE)
    assert jnp.allclose(out_r, ref_bf16[:12], atol=2e-3, rtol=2e-3)

    # Tiny batch (< one sublane group): row-pad path.
    out_s = jax.block_until_ready(net_forward(x[:2], prepared))
    assert out_s.shape == (2, OUTPUT_SIZE)
    assert jnp.allclose(out_s, ref_bf16[:2], atol=2e-3, rtol=2e-3)

    print("KERNEL_OK")
</pallas_src>

<mosaic_0001>
module attributes {stable_mosaic.version = 11 : i64} {
  func.func @mlp_logsoftmax_kernel(%arg0: i32, %arg1: memref<128x784xf32, #tpu.memory_space<vmem>>, %arg2: memref<784x128xbf16, #tpu.memory_space<vmem>>, %arg3: memref<1x128xf32, #tpu.memory_space<vmem>>, %arg4: memref<128x128xbf16, #tpu.memory_space<vmem>>, %arg5: memref<1x128xf32, #tpu.memory_space<vmem>>, %arg6: memref<128x128xbf16, #tpu.memory_space<vmem>>, %arg7: memref<1x128xf32, #tpu.memory_space<vmem>>, %arg8: memref<128x10xf32, #tpu.memory_space<vmem>>) attributes {dimension_semantics = [#tpu.dimension_semantics<parallel>], iteration_bounds = array<i64: 2>, scalar_prefetch = 0 : i64, scratch_operands = 0 : i64, tpu.core_type = #tpu.core_type<tc>, window_params = [{transform_indices = @transform_0, window_bounds = array<i64: 128, 784>}, {pipeline_mode = #tpu.pipeline_mode<synchronous>, transform_indices = @transform_1, window_bounds = array<i64: 784, 128>}, {pipeline_mode = #tpu.pipeline_mode<synchronous>, transform_indices = @transform_2, window_bounds = array<i64: 1, 128>}, {pipeline_mode = #tpu.pipeline_mode<synchronous>, transform_indices = @transform_3, window_bounds = array<i64: 128, 128>}, {pipeline_mode = #tpu.pipeline_mode<synchronous>, transform_indices = @transform_4, window_bounds = array<i64: 1, 128>}, {pipeline_mode = #tpu.pipeline_mode<synchronous>, transform_indices = @transform_5, window_bounds = array<i64: 128, 128>}, {pipeline_mode = #tpu.pipeline_mode<synchronous>, transform_indices = @transform_6, window_bounds = array<i64: 1, 128>}, {transform_indices = @transform_7, window_bounds = array<i64: 128, 10>}]} {
    %c0 = arith.constant 0 : index
    %c0_0 = arith.constant 0 : index
    %0 = vector.load %arg1[%c0, %c0_0] : memref<128x784xf32, #tpu.memory_space<vmem>>, vector<128x784xf32>
    %1 = arith.truncf %0 : vector<128x784xf32> to vector<128x784xbf16>
    %c0_1 = arith.constant 0 : index
    %c0_2 = arith.constant 0 : index
    %2 = vector.load %arg2[%c0_1, %c0_2] : memref<784x128xbf16, #tpu.memory_space<vmem>>, vector<784x128xbf16>
    %cst = arith.constant dense<0.000000e+00> : vector<128x128xf32>
    %3 = tpu.matmul %1, %2, %cst {dimension_numbers = #tpu.dot_dimension_numbers<[1], [0], [0], [1], [0, 0, 1, 1], [], []>} : vector<128x784xbf16>, vector<784x128xbf16>, vector<128x128xf32> -> vector<128x128xf32>
    %c0_3 = arith.constant 0 : index
    %c0_4 = arith.constant 0 : index
    %4 = vector.load %arg3[%c0_3, %c0_4] : memref<1x128xf32, #tpu.memory_space<vmem>>, vector<1x128xf32>
    %5 = vector.broadcast %4 : vector<1x128xf32> to vector<128x128xf32>
    %6 = arith.addf %3, %5 : vector<128x128xf32>
    %cst_5 = arith.constant 0.000000e+00 : f32
    %7 = vector.broadcast %cst_5 : f32 to vector<128x128xf32>
    %8 = arith.maximumf %6, %7 : vector<128x128xf32>
    %9 = arith.truncf %8 : vector<128x128xf32> to vector<128x128xbf16>
    %c0_6 = arith.constant 0 : index
    %c0_7 = arith.constant 0 : index
    %10 = vector.load %arg4[%c0_6, %c0_7] : memref<128x128xbf16, #tpu.memory_space<vmem>>, vector<128x128xbf16>
    %cst_8 = arith.constant dense<0.000000e+00> : vector<128x128xf32>
    %11 = tpu.matmul %9, %10, %cst_8 {dimension_numbers = #tpu.dot_dimension_numbers<[1], [0], [0], [1], [0, 0, 1, 1], [], []>} : vector<128x128xbf16>, vector<128x128xbf16>, vector<128x128xf32> -> vector<128x128xf32>
    %c0_9 = arith.constant 0 : index
    %c0_10 = arith.constant 0 : index
    %12 = vector.load %arg5[%c0_9, %c0_10] : memref<1x128xf32, #tpu.memory_space<vmem>>, vector<1x128xf32>
    %13 = vector.broadcast %12 : vector<1x128xf32> to vector<128x128xf32>
    %14 = arith.addf %11, %13 : vector<128x128xf32>
    %cst_11 = arith.constant 0.000000e+00 : f32
    %15 = vector.broadcast %cst_11 : f32 to vector<128x128xf32>
    %16 = arith.maximumf %14, %15 : vector<128x128xf32>
    %17 = arith.truncf %16 : vector<128x128xf32> to vector<128x128xbf16>
    %c0_12 = arith.constant 0 : index
    %c0_13 = arith.constant 0 : index
    %18 = vector.load %arg6[%c0_12, %c0_13] : memref<128x128xbf16, #tpu.memory_space<vmem>>, vector<128x128xbf16>
    %cst_14 = arith.constant dense<0.000000e+00> : vector<128x128xf32>
    %19 = tpu.matmul %17, %18, %cst_14 {dimension_numbers = #tpu.dot_dimension_numbers<[1], [0], [0], [1], [0, 0, 1, 1], [], []>} : vector<128x128xbf16>, vector<128x128xbf16>, vector<128x128xf32> -> vector<128x128xf32>
    %c0_15 = arith.constant 0 : index
    %c0_16 = arith.constant 0 : index
    %20 = vector.load %arg7[%c0_15, %c0_16] : memref<1x128xf32, #tpu.memory_space<vmem>>, vector<1x128xf32>
    %21 = vector.broadcast %20 : vector<1x128xf32> to vector<128x128xf32>
    %22 = arith.addf %19, %21 : vector<128x128xf32>
    %23 = tpu.iota {dimensions = array<i32: 1>} : vector<128x128xi32>
    %c10_i32 = arith.constant 10 : i32
    %24 = vector.broadcast %c10_i32 : i32 to vector<128x128xi32>
    %25 = arith.cmpi slt, %23, %24 : vector<128x128xi32>
    %cst_17 = arith.constant -1.000000e+30 : f32
    %26 = vector.broadcast %cst_17 : f32 to vector<128x128xf32>
    %27 = arith.select %25, %22, %26 : vector<128x128xi1>, vector<128x128xf32>
    %cst_18 = arith.constant dense<0xFF800000> : vector<128xf32>
    %28 = vector.multi_reduction <maximumf>, %27, %cst_18 [1] : vector<128x128xf32> to vector<128xf32>
    %29 = vector.shape_cast %28 : vector<128xf32> to vector<128x1xf32>
    %30 = vector.broadcast %29 : vector<128x1xf32> to vector<128x128xf32>
    %31 = arith.subf %27, %30 : vector<128x128xf32>
    %32 = math.exp %31 : vector<128x128xf32>
    %cst_19 = arith.constant dense<0.000000e+00> : vector<128xf32>
    %33 = vector.multi_reduction <add>, %32, %cst_19 [1] : vector<128x128xf32> to vector<128xf32>
    %34 = vector.shape_cast %33 : vector<128xf32> to vector<128x1xf32>
    %35 = math.log %34 : vector<128x1xf32>
    %36 = vector.broadcast %35 : vector<128x1xf32> to vector<128x128xf32>
    %37 = arith.subf %31, %36 : vector<128x128xf32>
    %38 = vector.extract_strided_slice %37 {offsets = [0, 0], sizes = [128, 10], strides = [1, 1]} : vector<128x128xf32> to vector<128x10xf32>
    %c0_20 = arith.constant 0 : index
    %c0_21 = arith.constant 0 : index
    %39 = vector.load %arg8[%c0_20, %c0_21] : memref<128x10xf32, #tpu.memory_space<vmem>>, vector<128x10xf32>
    tpu.vector_store %arg8[%c0_20, %c0_21], %38 {strides = array<i32>} : memref<128x10xf32, #tpu.memory_space<vmem>>, vector<128x10xf32>,
    return
  }
  func.func @transform_0(%arg0: i32) -> (i32, i32) {
    %c0_i32 = arith.constant 0 : i32
    %c0_i32_0 = arith.constant 0 : i32
    return %arg0, %c0_i32 : i32, i32
  }
  func.func @transform_1(%arg0: i32) -> (i32, i32) {
    %c0_i32 = arith.constant 0 : i32
    %c0_i32_0 = arith.constant 0 : i32
    %c0_i32_1 = arith.constant 0 : i32
    return %c0_i32, %c0_i32_0 : i32, i32
  }
  func.func @transform_2(%arg0: i32) -> (i32, i32) {
    %c0_i32 = arith.constant 0 : i32
    %c0_i32_0 = arith.constant 0 : i32
    %c0_i32_1 = arith.constant 0 : i32
    return %c0_i32, %c0_i32_0 : i32, i32
  }
  func.func @transform_3(%arg0: i32) -> (i32, i32) {
    %c0_i32 = arith.constant 0 : i32
    %c0_i32_0 = arith.constant 0 : i32
    %c0_i32_1 = arith.constant 0 : i32
    return %c0_i32, %c0_i32_0 : i32, i32
  }
  func.func @transform_4(%arg0: i32) -> (i32, i32) {
    %c0_i32 = arith.constant 0 : i32
    %c0_i32_0 = arith.constant 0 : i32
    %c0_i32_1 = arith.constant 0 : i32
    return %c0_i32, %c0_i32_0 : i32, i32
  }
  func.func @transform_5(%arg0: i32) -> (i32, i32) {
    %c0_i32 = arith.constant 0 : i32
    %c0_i32_0 = arith.constant 0 : i32
    %c0_i32_1 = arith.constant 0 : i32
    return %c0_i32, %c0_i32_0 : i32, i32
  }
  func.func @transform_6(%arg0: i32) -> (i32, i32) {
    %c0_i32 = arith.constant 0 : i32
    %c0_i32_0 = arith.constant 0 : i32
    %c0_i32_1 = arith.constant 0 : i32
    return %c0_i32, %c0_i32_0 : i32, i32
  }
  func.func @transform_7(%arg0: i32) -> (i32, i32) {
    %c0_i32 = arith.constant 0 : i32
    %c0_i32_0 = arith.constant 0 : i32
    return %arg0, %c0_i32 : i32, i32
  }
}

</mosaic_0001>

<bundles_post_ra>
// kernel: tpu_custom_call.1
= control target key start
LH: loop header
LB: loop body
LE: loop exit
PB: predicated region body
PF: predicated region fallthrough
CT: control target
= control target key end

     0   :  { %s2506_s24 = smov 0   ;;  %s3180_s0 = inlined_call_operand.vmem [shape: f32[256,784], index: 0, kind: input, shape index: {}]   ;;  %s3181_s1 = inlined_call_operand.vmem [shape: bf16[784,128], index: 1, kind: input, shape index: {}]   ;;  %s3182_s2 = inlined_call_operand.vmem [shape: f32[1,128], index: 2, kind: input, shape index: {}]   ;;  %s3183_s3 = inlined_call_operand.vmem [shape: bf16[128,128], index: 3, kind: input, shape index: {}]   ;;  %s3184_s4 = inlined_call_operand.vmem [shape: f32[1,128], index: 4, kind: input, shape index: {}]   ;;  %s3185_s5 = inlined_call_operand.vmem [shape: bf16[128,128], index: 5, kind: input, shape index: {}]   ;;  %s3186_s6 = inlined_call_operand.vmem [shape: f32[1,128], index: 6, kind: input, shape index: {}]   ;;  %s3187_s7 = inlined_call_operand.vmem [shape: f32[256,10], index: 7, kind: output, shape index: {}]  }
   0x1 LB: > { %s1902_s25 = sadd.s32 4294967295, %s2464_s24   ;;  %p1906_p0 = scmp.ge.s32.totalorder %s2464_s24, 1  ;;  %s2464_s24 = sphi %s2506_s24, %s17_s24  }
   0x2   : > { %p239_p1 = scmp.lt.s32.totalorder %s2464_s24, 3 }
   0x4   : > { %p240_p2 = pnand %p1906_p0, %p239_p1 }
   0x6   : > { %243 = sbr.rel (%p240_p2) target bundleno = 1091 (0x443), region = 48 }
   0xb   : > { %v2329_v0 = vld [vmem:[%s3181_s1 + $0x78] sm:$0xff]   ;;  %v2333_v4 = vld [vmem:[%s3181_s1 + $0x70] sm:$0xff]   ;;  %v2337_v8 = vld [vmem:[%s3181_s1 + $0x68] sm:$0xff]   ;;  %s1907_s12 = sshll.u32 %s1902_s25, 4  ;;  %vm853_vm0 = vcmask 130048   ;;  %vm1829_vm2 = vcmask 80896  }
   0xc   : > { %v2330_v1 = vld [vmem:[%s3181_s1 + $0xf8] sm:$0xff]   ;;  %1989 = vmatprep.subr.bf16.mxu0 %v2329_v0  ;;  %v2334_v5 = vld [vmem:[%s3181_s1 + $0xf0] sm:$0xff]   ;;  %v2338_v9 = vld [vmem:[%s3181_s1 + $0xe8] sm:$0xff]   ;;  %p273_p3 = scmp.lt.s32.totalorder %s1907_s12, 31 }
   0xd   : > { %v2331_v2 = vld [vmem:[%s3181_s1 + $0x38] sm:$0xff]   ;;  %2053 = vmatprep.subr.bf16.mxu1 %v2330_v1  ;;  %v2335_v6 = vld [vmem:[%s3181_s1 + $0x30] sm:$0xff]   ;;  %v2339_v10 = vld [vmem:[%s3181_s1 + $0x28] sm:$0xff]  }
   0xe   : > { %v2332_v3 = vld [vmem:[%s3181_s1 + $0xb8] sm:$0xff]   ;;  %1990 = vmatpush3.bf16.msra.mxu0 %v2331_v2  ;;  %v2336_v7 = vld [vmem:[%s3181_s1 + $0xb0] sm:$0xff]   ;;  %v2340_v11 = vld [vmem:[%s3181_s1 + $0xa8] sm:$0xff]   ;;  %s3199_s12 = smov (!%p273_p3, %s1907_s12), 31 }
   0xf   : > { %2054 = vmatpush3.bf16.msra.mxu1 %v2332_v3  ;;  %1991 = vmatprep.subr.bf16.mxu0 %v2333_v4  ;;  %v2341_v12 = vld [vmem:[%s3181_s1 + $0x60] sm:$0xff]   ;;  %v2345_v16 = vld [vmem:[%s3181_s1 + $0x58] sm:$0xff]   ;;  %v2349_v20 = vld [vmem:[%s3181_s1 + $0x50] sm:$0xff]   ;;  %s2320_s14 = smul.u32 56, %s3199_s12  ;;  %s1910_s19 = sshll.u32 %s3199_s12, 3 }
  0x10   : > { %2055 = vmatprep.subr.bf16.mxu1 %v2334_v5  ;;  %v2342_v13 = vld [vmem:[%s3181_s1 + $0xe0] sm:$0xff]   ;;  %v2346_v17 = vld [vmem:[%s3181_s1 + $0xd8] sm:$0xff]   ;;  %v2350_v21 = vld [vmem:[%s3181_s1 + $0xd0] sm:$0xff]   ;;  %s3127_s21 = scalar_lea.vmem %s3187_s7, %s1910_s19 }
  0x11   : > { %v2343_v14 = vld [vmem:[%s3181_s1 + $0x20] sm:$0xff]   ;;  %v2347_v18 = vld [vmem:[%s3181_s1 + $0x18] sm:$0xff]   ;;  %v2351_v22 = vld [vmem:[%s3181_s1 + $0x10] sm:$0xff]   ;;  %s2612_s26 = scalar_lea.vmem %s3180_s0, %s2320_s14 }
  0x12   : > { %1992 = vmatpush3.bf16.msra.mxu0 %v2335_v6  ;;  %v2344_v15 = vld [vmem:[%s3181_s1 + $0xa0] sm:$0xff]   ;;  %v2348_v19 = vld [vmem:[%s3181_s1 + $0x98] sm:$0xff]   ;;  %v2352_v23 = vld [vmem:[%s3181_s1 + $0x90] sm:$0xff]  }
  0x13   : > { %2056 = vmatpush3.bf16.msra.mxu1 %v2336_v7  ;;  %1993 = vmatprep.subr.bf16.mxu0 %v2337_v8  ;;  %v2353_v24 = vld [vmem:[%s3181_s1 + $0x48] sm:$0xff]   ;;  %v2357_v28 = vld [vmem:[%s3181_s1 + $0x40] sm:$0xff]   ;;  %v289_v34 = vld [vmem:[%s2612_s26 + $0x18] sm:$0xff] }
  0x14   : > { %2057 = vmatprep.subr.bf16.mxu1 %v2338_v9  ;;  %v2354_v25 = vld [vmem:[%s3181_s1 + $0xc8] sm:$0xff]   ;;  %v2358_v29 = vld [vmem:[%s3181_s1 + $0xc0] sm:$0xff]   ;;  %v296_v36 = vld [vmem:[%s2612_s26 + $0x50] sm:$0xff] }
  0x15   : > { %v2355_v26 = vld [vmem:[%s3181_s1 + $0x8] sm:$0xff]   ;;  %v2359_v30 = vld [vmem:[%s3181_s1] sm:$0xff]   ;;  %v293_v38 = vld [vmem:[%s2612_s26 + $0x38] sm:$0xff]  ;;  %v401_v39 = vpack.c.bf16 %v296_v36, %v289_v34 }
  0x16   : > { %1994 = vmatpush3.bf16.msra.mxu0 %v2339_v10  ;;  %v2356_v27 = vld [vmem:[%s3181_s1 + $0x88] sm:$0xff]   ;;  %v2360_v31 = vld [vmem:[%s3181_s1 + $0x80] sm:$0xff]   ;;  %v288_v41 = vld [vmem:[%s2612_s26 + $0x10] sm:$0xff] }
  0x17   : > { %2058 = vmatpush3.bf16.msra.mxu1 %v2340_v11  ;;  %1995 = vmatprep.subr.bf16.mxu0 %v2341_v12  ;;  %v287_v32 = vld [vmem:[%s2612_s26 + $0x8] sm:$0xff]  ;;  %v294_v33 = vld [vmem:[%s2612_s26 + $0x40] sm:$0xff]  ;;  %v2361_v44 = vld [vmem:[%s3181_s1 + $0x178] sm:$0xff]  }
  0x18   : > { %2059 = vmatprep.subr.bf16.mxu1 %v2342_v13  ;;  %v399_v35 = vpack.c.bf16 %v294_v33, %v287_v32  ;;  %v286_v37 = vld [vmem:[%s2612_s26] sm:$0xff]  ;;  %v295_v42 = vld [vmem:[%s2612_s26 + $0x48] sm:$0xff]  ;;  %1007 = vmatprep.mubr.bf16.mxu1 %v401_v39  ;;  %v2362_v45 = vld [vmem:[%s3181_s1 + $0x138] sm:$0xff]  }
  0x19   : > { %v398_v40 = vpack.c.bf16 %v293_v38, %v286_v37  ;;  %v400_v43 = vpack.c.bf16 %v295_v42, %v288_v41  ;;  %v301_v46 = vld [vmem:[%s2612_s26 + $0x78] sm:$0xff]  ;;  %v308_v47 = vld [vmem:[%s2612_s26 + $0xb0] sm:$0xff]  ;;  %v303_v48 = vld [vmem:[%s2612_s26 + $0x88] sm:$0xff] }
  0x1a   : > { %1996 = vmatpush3.bf16.msra.mxu0 %v2343_v14  ;;  %910 = vmatprep.mubr.bf16.mxu0 %v399_v35  ;;  %v310_v49 = vld [vmem:[%s2612_s26 + $0xc0] sm:$0xff]  ;;  %v406_v50 = vpack.c.bf16 %v308_v47, %v301_v46  ;;  %v300_v52 = vld [vmem:[%s2612_s26 + $0x70] sm:$0xff]  ;;  %v307_v53 = vld [vmem:[%s2612_s26 + $0xa8] sm:$0xff] }
  0x1b   : > { %2060 = vmatpush3.bf16.msra.mxu1 %v2344_v15  ;;  %1997 = vmatprep.subr.bf16.mxu0 %v2345_v16  ;;  %v408_v51 = vpack.c.bf16 %v310_v49, %v303_v48  ;;  %v302_v54 = vld [vmem:[%s2612_s26 + $0x80] sm:$0xff]  ;;  %v309_v55 = vld [vmem:[%s2612_s26 + $0xb8] sm:$0xff]  ;;  %v405_v56 = vpack.c.bf16 %v307_v53, %v300_v52  ;;  %v2363_v57 = vld [vmem:[%s3181_s1 + $0x170] sm:$0xff]  }
  0x1c   : > { %2061 = vmatprep.subr.bf16.mxu1 %v2346_v17  ;;  %v407_v58 = vpack.c.bf16 %v309_v55, %v302_v54  ;;  %v2364_v59 = vld [vmem:[%s3181_s1 + $0x130] sm:$0xff]   ;;  %v315_v60 = vld [vmem:[%s2612_s26 + $0xe8] sm:$0xff]  ;;  %v322_v61 = vld [vmem:[%s2612_s26 + $0x120] sm:$0xff] }
  0x1d   : > { %v413_v62 = vpack.c.bf16 %v322_v61, %v315_v60  ;;  %v317_v63 = vld [vmem:[%s2612_s26 + $0xf8] sm:$0xff]  ;;  %v324_v0 = vld [vmem:[%s2612_s26 + $0x130] sm:$0xff]  ;;  %v314_v2 = vld [vmem:[%s2612_s26 + $0xe0] sm:$0xff] }
  0x1e   : > { %1998 = vmatpush3.bf16.msra.mxu0 %v2347_v18  ;;  %v415_v1 = vpack.c.bf16 %v324_v0, %v317_v63  ;;  %v321_v3 = vld [vmem:[%s2612_s26 + $0x118] sm:$0xff]  ;;  %v316_v4 = vld [vmem:[%s2612_s26 + $0xf0] sm:$0xff]  ;;  %v2365_v5 = vld [vmem:[%s3181_s1 + $0x168] sm:$0xff]  }
  0x1f   : > { %2062 = vmatpush3.bf16.msra.mxu1 %v2348_v19  ;;  %1999 = vmatprep.subr.bf16.mxu0 %v2349_v20  ;;  %v2366_v6 = vld [vmem:[%s3181_s1 + $0x128] sm:$0xff]   ;;  %v329_v8 = vld [vmem:[%s2612_s26 + $0x158] sm:$0xff]  ;;  %v336_v9 = vld [vmem:[%s2612_s26 + $0x190] sm:$0xff]  ;;  %v412_v12 = vpack.c.bf16 %v321_v3, %v314_v2 }
  0x20   : > { %2063 = vmatprep.subr.bf16.mxu1 %v2350_v21  ;;  %v323_v7 = vld [vmem:[%s2612_s26 + $0x128] sm:$0xff]  ;;  %v338_v11 = vld [vmem:[%s2612_s26 + $0x1a0] sm:$0xff]  ;;  %v420_v14 = vpack.c.bf16 %v336_v9, %v329_v8  ;;  %v328_v18 = vld [vmem:[%s2612_s26 + $0x150] sm:$0xff] }
  0x21   : > { %v331_v10 = vld [vmem:[%s2612_s26 + $0x168] sm:$0xff]  ;;  %v414_v13 = vpack.c.bf16 %v323_v7, %v316_v4  ;;  %v2367_v15 = vld [vmem:[%s3181_s1 + $0x160] sm:$0xff]   ;;  %v337_v21 = vld [vmem:[%s2612_s26 + $0x198] sm:$0xff] }
  0x22   : > { %2000 = vmatpush3.bf16.msra.mxu0 %v2351_v22  ;;  %v422_v16 = vpack.c.bf16 %v338_v11, %v331_v10  ;;  %v2368_v17 = vld [vmem:[%s3181_s1 + $0x120] sm:$0xff]   ;;  %v335_v19 = vld [vmem:[%s2612_s26 + $0x188] sm:$0xff]  ;;  %v2371_v32 = vld [vmem:[%s3181_s1 + $0x150] sm:$0xff]  }
  0x23   : > { %2064 = vmatpush3.bf16.msra.mxu1 %v2352_v23  ;;  %2001 = vmatprep.subr.bf16.mxu0 %v2353_v24  ;;  %v330_v20 = vld [vmem:[%s2612_s26 + $0x160] sm:$0xff]  ;;  %v343_v22 = vld [vmem:[%s2612_s26 + $0x1c8] sm:$0xff]  ;;  %v2369_v24 = vld [vmem:[%s3181_s1 + $0x158] sm:$0xff]  }
  0x24   : > { %2065 = vmatprep.subr.bf16.mxu1 %v2354_v25  ;;  %v350_v23 = vld [vmem:[%s2612_s26 + $0x200] sm:$0xff]  ;;  %v345_v25 = vld [vmem:[%s2612_s26 + $0x1d8] sm:$0xff]  ;;  %v2372_v33 = vld [vmem:[%s3181_s1 + $0x110] sm:$0xff]  }
  0x25   : > { %v342_v34 = vld [vmem:[%s2612_s26 + $0x1c0] sm:$0xff]  ;;  %v349_v35 = vld [vmem:[%s2612_s26 + $0x1f8] sm:$0xff]  ;;  %v344_v36 = vld [vmem:[%s2612_s26 + $0x1d0] sm:$0xff] }
  0x26   : > { %2002 = vmatpush3.bf16.msra.mxu0 %v2355_v26  ;;  %v352_v26 = vld [vmem:[%s2612_s26 + $0x210] sm:$0xff]  ;;  %v351_v37 = vld [vmem:[%s2612_s26 + $0x208] sm:$0xff]  ;;  %v357_v38 = vld [vmem:[%s2612_s26 + $0x238] sm:$0xff] }
  0x27   : > { %2066 = vmatpush3.bf16.msra.mxu1 %v2356_v27  ;;  %2003 = vmatprep.subr.bf16.mxu0 %v2357_v28  ;;  %v2370_v27 = vld [vmem:[%s3181_s1 + $0x118] sm:$0xff]   ;;  %v419_v28 = vpack.c.bf16 %v335_v19, %v328_v18  ;;  %v364_v39 = vld [vmem:[%s2612_s26 + $0x270] sm:$0xff]  ;;  %v366_v41 = vld [vmem:[%s2612_s26 + $0x280] sm:$0xff] }
  0x28   : > { %2067 = vmatprep.subr.bf16.mxu1 %v2358_v29  ;;  %v421_v29 = vpack.c.bf16 %v337_v21, %v330_v20  ;;  %v2373_v42 = vld [vmem:[%s3181_s1 + $0x148] sm:$0xff]   ;;  %v434_v46 = vpack.c.bf16 %v364_v39, %v357_v38  ;;  %v356_v48 = vld [vmem:[%s2612_s26 + $0x230] sm:$0xff]  ;;  %v2375_v49 = vld [vmem:[%s3181_s1 + $0x140] sm:$0xff]  }
  0x29   : > { %v2376_v52 = vld [vmem:[%s3181_s1 + $0x100] sm:$0xff]   ;;  %v365_v53 = vld [vmem:[%s2612_s26 + $0x278] sm:$0xff]  ;;  %v371_v54 = vld [vmem:[%s2612_s26 + $0x2a8] sm:$0xff] }
  0x2a   : > { %2004 = vmatpush3.bf16.msra.mxu0 %v2359_v30  ;;  %v427_v30 = vpack.c.bf16 %v350_v23, %v343_v22  ;;  %v378_v55 = vld [vmem:[%s2612_s26 + $0x2e0] sm:$0xff]  ;;  %v377_v0 = vld [vmem:[%s2612_s26 + $0x2d8] sm:$0xff]  ;;  %v379_v2 = vld [vmem:[%s2612_s26 + $0x2e8] sm:$0xff] }
  0x2b   : > { %2068 = vmatpush3.bf16.msra.mxu1 %v2360_v31  ;;  %2117 = vmatprep.subr.bf16.mxu0 %v2361_v44  ;;  %v429_v31 = vpack.c.bf16 %v352_v26, %v345_v25  ;;  %v441_v60 = vpack.c.bf16 %v378_v55, %v371_v54  ;;  %v370_v63 = vld [vmem:[%s2612_s26 + $0x2a0] sm:$0xff]  ;;  %v385_v3 = vld [vmem:[%s2612_s26 + $0x318] sm:$0xff]  ;;  %v392_v4 = vld [vmem:[%s2612_s26 + $0x350] sm:$0xff] }
  0x2c   : > { %2304 = vmatprep.subr.bf16.mxu1 %v2361_v44  ;;  %v2374_v44 = vld [vmem:[%s3181_s1 + $0x108] sm:$0xff]   ;;  %v440_v7 = vpack.c.bf16 %v377_v0, %v370_v63  ;;  %v448_v9 = vpack.c.bf16 %v392_v4, %v385_v3  ;;  %v384_v11 = vld [vmem:[%s2612_s26 + $0x310] sm:$0xff]  ;;  %v382_v18 = vld [vmem:[%s2612_s26 + $0x300] sm:$0xff] }
  0x2d   : > { %911 = vmatmul.mubr.bf16.vlgmr.msra.gmra.mxu0 %v398_v40  ;;  %v359_v40 = vld [vmem:[%s2612_s26 + $0x248] sm:$0xff]  ;;  %v290_v23 = vld [vmem:[%s2612_s26 + $0x20] sm:$0xff]  ;;  %v381_v26 = vld [vmem:[%s2612_s26 + $0x2f8] sm:$0xff] }
  0x2e   : > { %1008 = vmatmul.mubr.bf16.vlgmr.msra.gmra.mxu1 %v400_v43  ;;  %2118 = vmatpush3.bf16.msra.mxu0 %v2362_v45  ;;  %v426_v43 = vpack.c.bf16 %v349_v35, %v342_v34  ;;  %v436_v47 = vpack.c.bf16 %v366_v41, %v359_v40  ;;  %v374_v25 = vld [vmem:[%s2612_s26 + $0x2c0] sm:$0xff]  ;;  %v304_v35 = vld [vmem:[%s2612_s26 + $0x90] sm:$0xff]  ;;  %v395_v38 = vld [vmem:[%s2612_s26 + $0x368] sm:$0xff] }
  0x2f   : > { %2312 = vmatpush3.bf16.msra.mxu1 %v2362_v45  ;;  %918 = vmatprep.mubr.bf16.mxu0 %v406_v50  ;;  %v428_v45 = vpack.c.bf16 %v351_v37, %v344_v36  ;;  %v363_v50 = vld [vmem:[%s2612_s26 + $0x268] sm:$0xff]  ;;  %v388_v37 = vld [vmem:[%s2612_s26 + $0x330] sm:$0xff]  ;;  %v326_v40 = vld [vmem:[%s2612_s26 + $0x140] sm:$0xff] }
  0x30   : > { %1015 = vmatprep.mubr.bf16.mxu1 %v408_v51  ;;  %2119 = vmatprep.subr.bf16.mxu0 %v2363_v57  ;;  %v358_v51 = vld [vmem:[%s2612_s26 + $0x240] sm:$0xff]  ;;  %v311_v36 = vld [vmem:[%s2612_s26 + $0xc8] sm:$0xff]  ;;  %v292_v41 = vld [vmem:[%s2612_s26 + $0x30] sm:$0xff] }
  0x31   : > { %2305 = vmatprep.subr.bf16.mxu1 %v2363_v57  ;;  %v380_v57 = vld [vmem:[%s2612_s26 + $0x2f0] sm:$0xff]  ;;  %v319_v39 = vld [vmem:[%s2612_s26 + $0x108] sm:$0xff]  ;;  %v354_v0 = vld [vmem:[%s2612_s26 + $0x220] sm:$0xff] }
  0x32   : > { %2120 = vmatpush3.bf16.msra.mxu0 %v2364_v59  ;;  %v327_v54 = vld [vmem:[%s2612_s26 + $0x148] sm:$0xff] }
  0x33   : > { %2313 = vmatpush3.bf16.msra.mxu1 %v2364_v59  ;;  %2121 = vmatprep.subr.bf16.mxu0 %v2365_v5  ;;  %v435_v59 = vpack.c.bf16 %v365_v53, %v358_v51  ;;  %v333_v51 = vld [vmem:[%s2612_s26 + $0x178] sm:$0xff]  ;;  %v320_v53 = vld [vmem:[%s2612_s26 + $0x110] sm:$0xff]  ;;  %v347_v63 = vld [vmem:[%s2612_s26 + $0x1e8] sm:$0xff] }
  0x34   : > { %2306 = vmatprep.subr.bf16.mxu1 %v2365_v5  ;;  %v387_v5 = vld [vmem:[%s2612_s26 + $0x328] sm:$0xff] }
  0x35   : > { %919 = vmatmul.mubr.bf16.gmra.mxu0 %v405_v56  ;;  %v373_v56 = vld [vmem:[%s2612_s26 + $0x2b8] sm:$0xff] }
  0x36   : > { %1016 = vmatmul.mubr.bf16.gmra.mxu1 %v407_v58  ;;  %926 = vmatprep.mubr.bf16.mxu0 %v413_v62  ;;  %v433_v58 = vpack.c.bf16 %v363_v50, %v356_v48  ;;  %v443_v61 = vpack.c.bf16 %v380_v57, %v373_v56  ;;  %v2377_v62 = vld [vmem:[%s3181_s1 + $0x180] sm:$0xff]   ;;  %v325_v48 = vld [vmem:[%s2612_s26 + $0x138] sm:$0xff] }
  0x37   : > { %1023 = vmatprep.mubr.bf16.mxu1 %v415_v1  ;;  %2122 = vmatpush3.bf16.msra.mxu0 %v2366_v6  ;;  %v372_v1 = vld [vmem:[%s2612_s26 + $0x2b0] sm:$0xff]  ;;  %v313_v50 = vld [vmem:[%s2612_s26 + $0xd8] sm:$0xff] }
  0x38   : > { %2314 = vmatpush3.bf16.msra.mxu1 %v2366_v6  ;;  %2123 = vmatprep.subr.bf16.mxu0 %v2367_v15  ;;  %v394_v6 = vld [vmem:[%s2612_s26 + $0x360] sm:$0xff]  ;;  %v442_v8 = vpack.c.bf16 %v379_v2, %v372_v1  ;;  %v348_v1 = vld [vmem:[%s2612_s26 + $0x1f0] sm:$0xff]  ;;  %v355_v2 = vld [vmem:[%s2612_s26 + $0x228] sm:$0xff] }
  0x39   : > { %2307 = vmatprep.subr.bf16.mxu1 %v2367_v15  ;;  %v450_v10 = vpack.c.bf16 %v394_v6, %v387_v5  ;;  %v291_v15 = vld [vmem:[%s2612_s26 + $0x28] sm:$0xff]  ;;  %v431_v5 = vpack.c.bf16 %v354_v0, %v347_v63  ;;  %v432_v6 = vpack.c.bf16 %v355_v2, %v348_v1  ;;  %v2390_v63 = vld [vmem:[%s3185_s5 + $0x18] sm:$0xff]  }
  0x3b   : > { %2124 = vmatpush3.bf16.msra.mxu0 %v2368_v17 }
  0x3c   : > { %2315 = vmatpush3.bf16.msra.mxu1 %v2368_v17  ;;  %2125 = vmatprep.subr.bf16.mxu0 %v2369_v24  ;;  %v375_v17 = vld [vmem:[%s2612_s26 + $0x2c8] sm:$0xff] }
  0x3d   : > { %927 = vmatmul.mubr.bf16.gmra.mxu0 %v412_v12  ;;  %2308 = vmatprep.subr.bf16.mxu1 %v2369_v24  ;;  %v391_v12 = vld [vmem:[%s2612_s26 + $0x348] sm:$0xff]  ;;  %v445_v22 = vpack.c.bf16 %v382_v18, %v375_v17  ;;  %v297_v24 = vld [vmem:[%s2612_s26 + $0x58] sm:$0xff] }
  0x3e   : > { %1024 = vmatmul.mubr.bf16.gmra.mxu1 %v414_v13  ;;  %934 = vmatprep.mubr.bf16.mxu0 %v420_v14  ;;  %v386_v13 = vld [vmem:[%s2612_s26 + $0x320] sm:$0xff]  ;;  %v393_v14 = vld [vmem:[%s2612_s26 + $0x358] sm:$0xff]  ;;  %v447_v19 = vpack.c.bf16 %v391_v12, %v384_v11  ;;  %v368_v12 = vld [vmem:[%s2612_s26 + $0x290] sm:$0xff] }
  0x3f   : > { %1031 = vmatprep.mubr.bf16.mxu1 %v422_v16  ;;  %2126 = vmatpush3.bf16.msra.mxu0 %v2370_v27  ;;  %v298_v16 = vld [vmem:[%s2612_s26 + $0x60] sm:$0xff]  ;;  %v449_v20 = vpack.c.bf16 %v393_v14, %v386_v13  ;;  %v361_v11 = vld [vmem:[%s2612_s26 + $0x258] sm:$0xff]  ;;  %v376_v13 = vld [vmem:[%s2612_s26 + $0x2d0] sm:$0xff] }
  0x40   : > { %2316 = vmatpush3.bf16.msra.mxu1 %v2370_v27  ;;  %2127 = vmatprep.subr.bf16.mxu0 %v2371_v32  ;;  %v403_v21 = vpack.c.bf16 %v298_v16, %v291_v15  ;;  %v305_v27 = vld [vmem:[%s2612_s26 + $0x98] sm:$0xff]  ;;  %v383_v14 = vld [vmem:[%s2612_s26 + $0x308] sm:$0xff]  ;;  %v438_v17 = vpack.c.bf16 %v368_v12, %v361_v11 }
  0x41   : > { %2309 = vmatprep.subr.bf16.mxu1 %v2371_v32  ;;  %v444_v32 = vpack.c.bf16 %v381_v26, %v374_v25  ;;  %v446_v18 = vpack.c.bf16 %v383_v14, %v376_v13  ;;  %v2378_v25 = vld [vmem:[%s3183_s3 + $0x38] sm:$0xff]   ;;  %v2379_v26 = vld [vmem:[%s3183_s3 + $0x30] sm:$0xff]  }
  0x43   : > { %2128 = vmatpush3.bf16.msra.mxu0 %v2372_v33 }
  0x44   : > { %2317 = vmatpush3.bf16.msra.mxu1 %v2372_v33  ;;  %2129 = vmatprep.subr.bf16.mxu0 %v2373_v42 }
  0x45   : > { %935 = vmatmul.mubr.bf16.gmra.mxu0 %v419_v28  ;;  %2310 = vmatprep.subr.bf16.mxu1 %v2373_v42  ;;  %v312_v28 = vld [vmem:[%s2612_s26 + $0xd0] sm:$0xff]  ;;  %v299_v42 = vld [vmem:[%s2612_s26 + $0x68] sm:$0xff] }
  0x46   : > { %1032 = vmatmul.mubr.bf16.gmra.mxu1 %v421_v29  ;;  %942 = vmatprep.mubr.bf16.mxu0 %v427_v30  ;;  %v389_v29 = vld [vmem:[%s2612_s26 + $0x338] sm:$0xff]  ;;  %v396_v30 = vld [vmem:[%s2612_s26 + $0x370] sm:$0xff]  ;;  %v410_v33 = vpack.c.bf16 %v312_v28, %v305_v27  ;;  %v2380_v27 = vld [vmem:[%s3183_s3 + $0x28] sm:$0xff]  }
  0x47   : > { %1039 = vmatprep.mubr.bf16.mxu1 %v429_v31  ;;  %2130 = vmatpush3.bf16.msra.mxu0 %v2374_v44  ;;  %v402_v31 = vpack.c.bf16 %v297_v24, %v290_v23  ;;  %v452_v34 = vpack.c.bf16 %v396_v30, %v389_v29  ;;  %v2381_v28 = vld [vmem:[%s3183_s3 + $0x20] sm:$0xff]   ;;  %v2382_v29 = vld [vmem:[%s3183_s3 + $0x18] sm:$0xff]   ;;  %v2383_v30 = vld [vmem:[%s3183_s3 + $0x10] sm:$0xff]  }
  0x48   : > { %2318 = vmatpush3.bf16.msra.mxu1 %v2374_v44  ;;  %2131 = vmatprep.subr.bf16.mxu0 %v2375_v49  ;;  %v451_v44 = vpack.c.bf16 %v395_v38, %v388_v37  ;;  %v2824_v37 = vld [vmem:[%s3182_s2] ss:$0 sm:$0xff] }
  0x49   : > { %2311 = vmatprep.subr.bf16.mxu1 %v2375_v49  ;;  %v306_v49 = vld [vmem:[%s2612_s26 + $0xa0] sm:$0xff] }
  0x4a   : > { %v411_v56 = vpack.c.bf16 %v313_v50, %v306_v49 }
  0x4b   : > { %2132 = vmatpush3.bf16.msra.mxu0 %v2376_v52 }
  0x4c   : > { %2319 = vmatpush3.bf16.msra.mxu1 %v2376_v52  ;;  %v340_v52 = vld [vmem:[%s2612_s26 + $0x1b0] sm:$0xff] }
  0x4d   : > { %943 = vmatmul.mubr.bf16.gmra.mxu0 %v426_v43  ;;  %2222 = vmatprep.subr.bf16.mxu1 %v2377_v62  ;;  %v409_v43 = vpack.c.bf16 %v311_v36, %v304_v35  ;;  %v424_v57 = vpack.c.bf16 %v340_v52, %v333_v51  ;;  %v2386_v35 = vld [vmem:[%s3185_s5 + $0x38] sm:$0xff]   ;;  %v2387_v36 = vld [vmem:[%s3185_s5 + $0x30] sm:$0xff]  }
  0x4e   : > { %1040 = vmatmul.mubr.bf16.gmra.mxu1 %v428_v45  ;;  %950 = vmatprep.mubr.bf16.mxu0 %v434_v46  ;;  %v417_v45 = vpack.c.bf16 %v326_v40, %v319_v39  ;;  %v404_v46 = vpack.c.bf16 %v299_v42, %v292_v41 }
  0x4f   : > { %1047 = vmatprep.mubr.bf16.mxu1 %v436_v47  ;;  %v318_v47 = vld [vmem:[%s2612_s26 + $0x100] sm:$0xff]  ;;  %2272 = vmatprep.subr.bf16.mxu0 %v2386_v35 }
  0x50   : > { %v416_v55 = vpack.c.bf16 %v325_v48, %v318_v47 }
  0x55   : > { %951 = vmatmul.mubr.bf16.gmra.mxu0 %v433_v58  ;;  %v418_v58 = vpack.c.bf16 %v327_v54, %v320_v53  ;;  %v2389_v54 = vld [vmem:[%s3185_s5 + $0x20] sm:$0xff]  }
  0x56   : > { %1048 = vmatmul.mubr.bf16.gmra.mxu1 %v435_v59  ;;  %958 = vmatprep.mubr.bf16.mxu0 %v441_v60  ;;  %v332_v59 = vld [vmem:[%s2612_s26 + $0x170] sm:$0xff]  ;;  %v339_v60 = vld [vmem:[%s2612_s26 + $0x1a8] sm:$0xff] }
  0x57   : > { %1055 = vmatprep.mubr.bf16.mxu1 %v443_v61  ;;  %v334_v61 = vld [vmem:[%s2612_s26 + $0x180] sm:$0xff]  ;;  %v423_v3 = vpack.c.bf16 %v339_v60, %v332_v59 }
  0x5d   : > { %959 = vmatmul.mubr.bf16.gmra.mxu0 %v440_v7  ;;  %v346_v7 = vld [vmem:[%s2612_s26 + $0x1e0] sm:$0xff] }
  0x5e   : > { %1056 = vmatmul.mubr.bf16.gmra.mxu1 %v442_v8  ;;  %966 = vmatprep.mubr.bf16.mxu0 %v448_v9  ;;  %v353_v8 = vld [vmem:[%s2612_s26 + $0x218] sm:$0xff]  ;;  %v362_v9 = vld [vmem:[%s2612_s26 + $0x260] sm:$0xff] }
  0x5f   : > { %1063 = vmatprep.mubr.bf16.mxu1 %v450_v10  ;;  %v369_v10 = vld [vmem:[%s2612_s26 + $0x298] sm:$0xff]  ;;  %v430_v15 = vpack.c.bf16 %v353_v8, %v346_v7 }
  0x60   : > { %v439_v16 = vpack.c.bf16 %v369_v10, %v362_v9 }
  0x65   : > { %967 = vmatmul.mubr.bf16.gmra.mxu0 %v447_v19  ;;  %v360_v19 = vld [vmem:[%s2612_s26 + $0x250] sm:$0xff] }
  0x66   : > { %1064 = vmatmul.mubr.bf16.gmra.mxu1 %v449_v20  ;;  %1104 = vmatprep.mubr.bf16.mxu0 %v403_v21  ;;  %v367_v20 = vld [vmem:[%s2612_s26 + $0x288] sm:$0xff]  ;;  %v390_v21 = vld [vmem:[%s2612_s26 + $0x340] sm:$0xff] }
  0x67   : > { %1152 = vmatprep.mubr.bf16.mxu1 %v445_v22  ;;  %v397_v22 = vld [vmem:[%s2612_s26 + $0x378] sm:$0xff]  ;;  %v437_v23 = vpack.c.bf16 %v367_v20, %v360_v19 }
  0x68   : > { %v453_v24 = vpack.c.bf16 %v397_v22, %v390_v21 }
  0x6d   : > { %1105 = vmatmul.mubr.bf16.vlgmr.msra.gmra.mxu0 %v402_v31  ;;  %v2384_v31 = vld [vmem:[%s3183_s3 + $0x8] sm:$0xff]  }
  0x6e   : > { %1153 = vmatmul.mubr.bf16.vlgmr.msra.gmra.mxu1 %v444_v32  ;;  %1112 = vmatprep.mubr.bf16.mxu0 %v410_v33  ;;  %v2385_v32 = vld [vmem:[%s3183_s3] sm:$0xff]  }
  0x6f   : > { %1160 = vmatprep.mubr.bf16.mxu1 %v452_v34  ;;  %2223 = vmatpush3.bf16.msra.mxu1 %v2377_v62  ;;  %v341_v62 = vld [vmem:[%s2612_s26 + $0x1b8] sm:$0xff] }
  0x70   : > { %v425_v4 = vpack.c.bf16 %v341_v62, %v334_v61  ;;  %2240 = vmatprep.subr.bf16.mxu1 %v2378_v25  ;;  %2273 = vmatpush3.bf16.msra.mxu0 %v2386_v35 }
  0x71   : > { %2274 = vmatprep.subr.bf16.mxu0 %v2387_v36 }
  0x74   : > { %2275 = vmatpush3.bf16.msra.mxu0 %v2387_v36 }
  0x75   : > { %1113 = vmatmul.mubr.bf16.gmra.mxu0 %v409_v43 }
  0x76   : > { %1161 = vmatmul.mubr.bf16.gmra.mxu1 %v451_v44  ;;  %1120 = vmatprep.mubr.bf16.mxu0 %v417_v45  ;;  %v2388_v45 = vld [vmem:[%s3185_s5 + $0x28] sm:$0xff]  }
  0x77   : > { %2224 = vmatprep.mubr.msk.bf16.mxu1 %vm853_vm0, %v404_v46  ;;  %2276 = vmatprep.subr.bf16.mxu0 %v2388_v45 }
  0x78   : > { %2277 = vmatpush3.bf16.msra.mxu0 %v2388_v45 }
  0x79   : > { %2278 = vmatprep.subr.bf16.mxu0 %v2389_v54 }
  0x7c   : > { %2279 = vmatpush3.bf16.msra.mxu0 %v2389_v54 }
  0x7d   : > { %1121 = vmatmul.mubr.bf16.gmra.mxu0 %v416_v55  ;;  %2280 = vmatprep.subr.bf16.mxu0 %v2390_v63 }
  0x7e   : > { %2225 = vmatmul.mubr.msk.bf16.vlgmr.msra.gmra.mxu1 %vm853_vm0, %v411_v56  ;;  %1128 = vmatprep.mubr.bf16.mxu0 %v424_v57 }
  0x7f   : > { %2228 = vmatprep.mubr.msk.bf16.mxu1 %vm853_vm0, %v418_v58  ;;  %2241 = vmatpush3.bf16.msra.mxu1 %v2378_v25 }
  0x80   : > { %2242 = vmatprep.subr.bf16.mxu1 %v2379_v26  ;;  %2281 = vmatpush3.bf16.msra.mxu0 %v2390_v63 }
  0x83   : > { %2243 = vmatpush3.bf16.msra.mxu1 %v2379_v26 }
  0x84   : > { %2244 = vmatprep.subr.bf16.mxu1 %v2380_v27 }
  0x85   : > { %1129 = vmatmul.mubr.bf16.gmra.mxu0 %v423_v3 }
  0x86   : > { %2229 = vmatmul.mubr.msk.bf16.gmra.mxu1 %vm853_vm0, %v425_v4  ;;  %1136 = vmatprep.mubr.bf16.mxu0 %v431_v5 }
  0x87   : > { %2232 = vmatprep.mubr.msk.bf16.mxu1 %vm853_vm0, %v432_v6  ;;  %2245 = vmatpush3.bf16.msra.mxu1 %v2380_v27 }
  0x88   : > { %2246 = vmatprep.subr.bf16.mxu1 %v2381_v28 }
  0x8b   : > { %2247 = vmatpush3.bf16.msra.mxu1 %v2381_v28 }
  0x8c   : > { %2248 = vmatprep.subr.bf16.mxu1 %v2382_v29 }
  0x8d   : > { %1137 = vmatmul.mubr.bf16.gmra.mxu0 %v430_v15 }
  0x8e   : > { %2233 = vmatmul.mubr.msk.bf16.gmra.mxu1 %vm853_vm0, %v439_v16  ;;  %1144 = vmatprep.mubr.bf16.mxu0 %v438_v17 }
  0x8f   : > { %2236 = vmatprep.mubr.msk.bf16.mxu1 %vm853_vm0, %v446_v18  ;;  %2249 = vmatpush3.bf16.msra.mxu1 %v2382_v29 }
  0x90   : > { %2250 = vmatprep.subr.bf16.mxu1 %v2383_v30 }
  0x93   : > { %2251 = vmatpush3.bf16.msra.mxu1 %v2383_v30 }
  0x94   : > { %2252 = vmatprep.subr.bf16.mxu1 %v2384_v31 }
  0x95   : > { %1145 = vmatmul.mubr.bf16.gmra.mxu0 %v437_v23 }
  0x96   : > { %2237 = vmatmul.mubr.msk.bf16.gmra.mxu1 %vm853_vm0, %v453_v24 }
  0x97   : > { %2253 = vmatpush3.bf16.msra.mxu1 %v2384_v31 }
  0x98   : > { %2254 = vmatprep.subr.bf16.mxu1 %v2385_v32 }
  0x9b   : > { %2255 = vmatpush3.bf16.msra.mxu1 %v2385_v32 }
  0xed   : > { %v2005_v33 = vpop.f32.mrf.mxu0 }
  0xee   : > { %v2069_v34 = vpop.f32.mrf.mxu1 }
  0xef   : > { %v2006_v38 = vpop.f32.mrf.mxu0 }
  0xf0   : > { %v2007_v39 = vadd.f32 %v2006_v38, %v2005_v33  ;;  %v2070_v40 = vpop.f32.mrf.mxu1 }
  0xf1   : > { %v2071_v41 = vadd.f32 %v2070_v40, %v2069_v34  ;;  %v2008_v42 = vpop.f32.mrf.mxu0 }
  0xf2   : > { %v913_v43 = vadd.f32 %v2007_v39, %v2824_v37  ;;  %v2072_v44 = vpop.f32.mrf.mxu1 }
  0xf3   : > { %v2009_v46 = vpop.f32.mrf.mxu0 }
  0xf4   : > { %v2830_v47 = vadd.f32 %v2071_v41, %v913_v43  ;;  %v2010_v48 = vadd.f32 %v2009_v46, %v2008_v42  ;;  %v2073_v49 = vpop.f32.mrf.mxu1 }
  0xf5   : > { %v2074_v50 = vadd.f32 %v2073_v49, %v2072_v44  ;;  %v2011_v51 = vpop.f32.mrf.mxu0 }
  0xf6   : > { %v916_v52 = vadd.f32 %v2010_v48, %v2824_v37  ;;  %v2075_v53 = vpop.f32.mrf.mxu1 }
  0xf7   : > { %v2012_v55 = vpop.f32.mrf.mxu0 }
  0xf8   : > { %v2836_v56 = vadd.f32 %v2074_v50, %v916_v52  ;;  %v2013_v57 = vadd.f32 %v2012_v55, %v2011_v51  ;;  %v2076_v58 = vpop.f32.mrf.mxu1 }
  0xf9   : > { %v2077_v59 = vadd.f32 %v2076_v58, %v2075_v53  ;;  %v2014_v60 = vpop.f32.mrf.mxu0 }
  0xfa   : > { %v921_v61 = vadd.f32 %v2013_v57, %v2824_v37  ;;  %v2078_v62 = vpop.f32.mrf.mxu1 }
  0xfb   : > { %v2015_v0 = vpop.f32.mrf.mxu0 }
  0xfc   : > { %v2842_v1 = vadd.f32 %v2077_v59, %v921_v61  ;;  %v2016_v2 = vadd.f32 %v2015_v0, %v2014_v60  ;;  %v2079_v3 = vpop.f32.mrf.mxu1 }
  0xfd   : > { %v2080_v4 = vadd.f32 %v2079_v3, %v2078_v62  ;;  %v2017_v5 = vpop.f32.mrf.mxu0 }
  0xfe   : > { %v924_v6 = vadd.f32 %v2016_v2, %v2824_v37  ;;  %v2081_v7 = vpop.f32.mrf.mxu1 }
  0xff   : > { %v2018_v8 = vpop.f32.mrf.mxu0 }
 0x100   : > { %v2845_v9 = vadd.f32 %v2080_v4, %v924_v6  ;;  %v2019_v10 = vadd.f32 %v2018_v8, %v2017_v5  ;;  %v2082_v11 = vpop.f32.mrf.mxu1 }
 0x101   : > { %v2083_v12 = vadd.f32 %v2082_v11, %v2081_v7  ;;  %v2020_v13 = vpop.f32.mrf.mxu0 }
 0x102   : > { %v929_v14 = vadd.f32 %v2019_v10, %v2824_v37  ;;  %v2084_v15 = vpop.f32.mrf.mxu1 }
 0x103   : > { %v2021_v16 = vpop.f32.mrf.mxu0 }
 0x104   : > { %v2848_v17 = vadd.f32 %v2083_v12, %v929_v14  ;;  %v2022_v18 = vadd.f32 %v2021_v16, %v2020_v13  ;;  %v2085_v19 = vpop.f32.mrf.mxu1 }
 0x105   : > { %v2086_v20 = vadd.f32 %v2085_v19, %v2084_v15  ;;  %v2023_v21 = vpop.f32.mrf.mxu0 }
 0x106   : > { %v932_v22 = vadd.f32 %v2022_v18, %v2824_v37  ;;  %v2087_v23 = vpop.f32.mrf.mxu1 }
 0x107   : > { %v2024_v24 = vpop.f32.mrf.mxu0 }
 0x108   : > { %v2851_v25 = vadd.f32 %v2086_v20, %v932_v22  ;;  %v2025_v26 = vadd.f32 %v2024_v24, %v2023_v21  ;;  %v2088_v27 = vpop.f32.mrf.mxu1 }
 0x109   : > { %v2089_v28 = vadd.f32 %v2088_v27, %v2087_v23  ;;  %v2853_v29 = vpop.f32.mrf.mxu0 }
 0x10a   : > { %v937_v30 = vadd.f32 %v2025_v26, %v2824_v37  ;;  %v2856_v31 = vpop.f32.mrf.mxu1 }
 0x10b   : > { %v2858_v32 = vpop.f32.mrf.mxu0 }
 0x10c   : > { %v2860_v33 = vadd.f32 %v2089_v28, %v937_v30  ;;  %v2862_v34 = vpop.f32.mrf.mxu1 }
 0x10d   : > { %v2029_v35 = vpop.f32.mrf.mxu0 }
 0x10e   : > { %v2093_v36 = vpop.f32.mrf.mxu1 }
 0x10f   : > { %v2030_v38 = vpop.f32.mrf.mxu0 }
 0x110   : > { %v2031_v39 = vadd.f32 %v2030_v38, %v2029_v35  ;;  %v2094_v40 = vpop.f32.mrf.mxu1 }
 0x111   : > { %v2095_v41 = vadd.f32 %v2094_v40, %v2093_v36  ;;  %v2864_v42 = vpop.f32.mrf.mxu0 }
 0x112   : > { %v945_v43 = vadd.f32 %v2031_v39, %v2824_v37  ;;  %v2867_v44 = vpop.f32.mrf.mxu1 }
 0x113   : > { %v2869_v45 = vpop.f32.mrf.mxu0 }
 0x114   : > { %v2871_v46 = vadd.f32 %v2095_v41, %v945_v43  ;;  %v2873_v48 = vpop.f32.mrf.mxu1 }
 0x115   : > { %v2035_v49 = vpop.f32.mrf.mxu0 }
 0x116   : > { %v2099_v50 = vpop.f32.mrf.mxu1 }
 0x117   : > { %v2036_v51 = vpop.f32.mrf.mxu0 }
 0x118   : > { %v2037_v52 = vadd.f32 %v2036_v51, %v2035_v49  ;;  %v2100_v53 = vpop.f32.mrf.mxu1 }
 0x119   : > { %v2101_v54 = vadd.f32 %v2100_v53, %v2099_v50  ;;  %v2875_v55 = vpop.f32.mrf.mxu0 }
 0x11a   : > { %v953_v57 = vadd.f32 %v2037_v52, %v2824_v37  ;;  %v2878_v58 = vpop.f32.mrf.mxu1 }
 0x11b   : > { %v2880_v59 = vpop.f32.mrf.mxu0 }
 0x11c   : > { %v2882_v60 = vadd.f32 %v2101_v54, %v953_v57  ;;  %v2884_v61 = vpop.f32.mrf.mxu1 }
 0x11d   : > { %v2886_v62 = vpop.f32.mrf.mxu0 }
 0x11e   : > { %v2888_v63 = vpop.f32.mrf.mxu1 }
 0x11f   : > { %v2890_v0 = vpop.f32.mrf.mxu0 }
 0x120   : > { %v2892_v2 = vpop.f32.mrf.mxu1 }
 0x121   : > { %v2894_v3 = vpop.f32.mrf.mxu0 }
 0x122   : > { %v2896_v4 = vpop.f32.mrf.mxu1 }
 0x123   : > { %v2898_v5 = vpop.f32.mrf.mxu0 }
 0x124   : > { %v2900_v6 = vpop.f32.mrf.mxu1 }
 0x125   : > { %v2902_v7 = vpop.f32.mrf.mxu0 }
 0x126   : > { %v2904_v8 = vpop.f32.mrf.mxu1 }
 0x127   : > { %3188 = vst [vmem:[#allocation2_spill] sm:$0xff] %v2904_v8  ;;  %v2906_v10 = vpop.f32.mrf.mxu0 }
 0x128   : > { %v2908_v11 = vpop.f32.mrf.mxu1 }
 0x129   : > { %3189 = vst [vmem:[#allocation3_spill] sm:$0xff] %v2908_v11  ;;  %v2910_v12 = vpop.f32.mrf.mxu0 }
 0x12a   : > { %v2912_v13 = vpop.f32.mrf.mxu1 }
 0x12b   : > { %v2914_v14 = vpop.f32.mrf.mxu0 }
 0x12c   : > { %v2916_v15 = vpop.f32.mrf.mxu1 }
 0x12d   : > { %v2133_v16 = vpop.f32.mrf.mxu0 }
 0x12e   : > { %v2918_v18 = vpop.f32.mrf.mxu1 }
 0x12f   : > { %v2134_v19 = vpop.f32.mrf.mxu0 }
 0x130   : > { %v2920_v20 = vpop.f32.mrf.mxu1  ;;  %v2135_v41 = vadd.f32 %v2134_v19, %v2133_v16  ;;  %v2028_v19 = vadd.f32 %v2858_v32, %v2853_v29 }
 0x131   : > { %v2136_v21 = vpop.f32.mrf.mxu0 }
 0x132   : > { %v2922_v22 = vpop.f32.mrf.mxu1 }
 0x133   : > { %v2137_v23 = vpop.f32.mrf.mxu0 }
 0x134   : > { %v2924_v24 = vpop.f32.mrf.mxu1  ;;  %v2138_v51 = vadd.f32 %v2137_v23, %v2136_v21 }
 0x135   : > { %v2139_v26 = vpop.f32.mrf.mxu0 }
 0x136   : > { %v2926_v27 = vpop.f32.mrf.mxu1  ;;  %v1110_v16 = vadd.f32 %v2138_v51, %v2836_v56  ;;  %v2092_v56 = vadd.f32 %v2862_v34, %v2856_v31 }
 0x137   : > { %3190 = vst [vmem:[#allocation4_spill] sm:$0xff] %v2926_v27  ;;  %v2140_v28 = vpop.f32.mrf.mxu0  ;;  %v1107_v27 = vadd.f32 %v2135_v41, %v2830_v47 }
 0x138   : > { %v2928_v30 = vpop.f32.mrf.mxu1  ;;  %v2141_v38 = vadd.f32 %v2140_v28, %v2139_v26 }
 0x139   : > { %3191 = vst [vmem:[#allocation5_spill] sm:$0xff] %v2928_v30  ;;  %v2142_v35 = vpop.f32.mrf.mxu0 }
 0x13a   : > { %v2930_v36 = vpop.f32.mrf.mxu1  ;;  %v1115_v52 = vadd.f32 %v2141_v38, %v2842_v1 }
 0x13b   : > { %3192 = vst [vmem:[#allocation6_spill] sm:$0xff] %v2930_v36  ;;  %v2143_v39 = vpop.f32.mrf.mxu0 }
 0x13c   : > { %v2932_v40 = vpop.f32.mrf.mxu1  ;;  %v2144_v43 = vadd.f32 %v2143_v39, %v2142_v35 }
 0x13d   : > { %v2145_v49 = vpop.f32.mrf.mxu0 }
 0x13e   : > { %v2226_v50 = vpop.f32.mrf.mxu1  ;;  %v1118_v11 = vadd.f32 %v2144_v43, %v2845_v9 }
 0x13f   : > { %v2146_v53 = vpop.f32.mrf.mxu0  ;;  %v1212_v57 = vadd.f32 %v2226_v50, %v1115_v52 }
 0x140   : > { %v1203_v54 = vpop.f32.mrf.mxu1  ;;  %v2147_v1 = vadd.f32 %v2146_v53, %v2145_v49 }
 0x141   : > { %v2148_v30 = vpop.f32.mrf.mxu0  ;;  %v1204_v26 = vadd.f32 %v1203_v54, %v1107_v27  ;;  %v1268_v23 = vmax.f32 %v1212_v57, 0.0 }
 0x142   : > { %v2227_v36 = vpop.f32.mrf.mxu1  ;;  %v1123_v32 = vadd.f32 %v2147_v1, %v2848_v17 }
 0x143   : > { %v1215_v28 = vadd.f32 %v2227_v36, %v1118_v11  ;;  %v2149_v8 = vpop.f32.mrf.mxu0  ;;  %v1266_v47 = vmax.f32 %v1204_v26, 0.0  ;;  %v940_v11 = vadd.f32 %v2028_v19, %v2824_v37  ;;  %v2034_v26 = vadd.f32 %v2869_v45, %v2864_v42 }
 0x144   : > { %v1206_v21 = vpop.f32.mrf.mxu1  ;;  %v2150_v52 = vadd.f32 %v2149_v8, %v2148_v30  ;;  %v2046_v45 = vadd.f32 %v2898_v5, %v2894_v3  ;;  %v2110_v5 = vadd.f32 %v2900_v6, %v2896_v4  ;;  %v2052_v4 = vadd.f32 %v2914_v14, %v2910_v12 }
 0x145   : > { %v1269_v35 = vmax.f32 %v1215_v28, 0.0  ;;  %v1207_v38 = vadd.f32 %v1206_v21, %v1110_v16  ;;  %v2151_v39 = vpop.f32.mrf.mxu0  ;;  %v1037_v30 = vadd.f32 %v2092_v56, %v940_v11  ;;  %v2040_v11 = vadd.f32 %v2880_v59, %v2875_v55 }
 0x146   : > { %v2230_v50 = vpop.f32.mrf.mxu1  ;;  %v1126_v8 = vadd.f32 %v2150_v52, %v2851_v25  ;;  %v2098_v25 = vadd.f32 %v2873_v48, %v2867_v44  ;;  %v2043_v56 = vadd.f32 %v2890_v0, %v2886_v62  ;;  %v964_v3 = vadd.f32 %v2046_v45, %v2824_v37 }
 0x147   : > { %v1283_v41 = vpack.c.bf16 %v1269_v35, %v1268_v23  ;;  %v1267_v9 = vmax.f32 %v1207_v38, 0.0  ;;  %v2152_v43 = vpop.f32.mrf.mxu0  ;;  %v948_v35 = vadd.f32 %v2034_v26, %v2824_v37  ;;  %v956_v62 = vadd.f32 %v2040_v11, %v2824_v37 }
 0x148   : > { %v2153_v27 = vadd.f32 %v2152_v43, %v2151_v39  ;;  %v1219_v36 = vpop.f32.mrf.mxu1  ;;  %v961_v0 = vadd.f32 %v2043_v56, %v2824_v37  ;;  %v2049_v26 = vadd.f32 %v2906_v10, %v2902_v7  ;;  %v972_v14 = vadd.f32 %v2052_v4, %v2824_v37 }
 0x149   : > { %v1282_v29 = vpack.c.bf16 %v1267_v9, %v1266_v47  ;;  %v2154_v49 = vpop.f32.mrf.mxu0  ;;  %v1220_v54 = vadd.f32 %v1219_v36, %v1123_v32  ;;  %v1045_v48 = vadd.f32 %v2098_v25, %v948_v35 }
 0x14a   : > { %v1131_v51 = vadd.f32 %v2153_v27, %v2860_v33  ;;  %v2231_v53 = vpop.f32.mrf.mxu1 }
 0x14b   : > { %2256 = vmatprep.mubr.bf16.mxu1 %v1282_v29  ;;  %v2155_v57 = vpop.f32.mrf.mxu0  ;;  %v1270_v33 = vmax.f32 %v1220_v54, 0.0 }
 0x14c   : > { %v2156_v28 = vadd.f32 %v2155_v57, %v2154_v49  ;;  %v1222_v31 = vpop.f32.mrf.mxu1  ;;  %2257 = vmatmul.mubr.bf16.vlgmr.msra.gmra.mxu1 %v1283_v41  ;;  %v1228_v19 = vadd.f32 %v2230_v50, %v1131_v51  ;;  %v2107_v51 = vadd.f32 %v2892_v2, %v2888_v63  ;;  %v1061_v57 = vadd.f32 %v2110_v5, %v964_v3  ;;  %v2392_v3 = vld [vmem:[%s3185_s5 + $0x8] sm:$0xff]   ;;  %v2393_v5 = vld [vmem:[%s3185_s5] sm:$0xff]  }
 0x14d   : > { %v1223_v34 = vadd.f32 %v1222_v31, %v1126_v8  ;;  %v2157_v16 = vpop.f32.mrf.mxu0  ;;  %v2171_v8 = vadd.f32 %v2920_v20, %v2918_v18 }
 0x14e   : > { %v1134_v17 = vadd.f32 %v2156_v28, %v1037_v30  ;;  %v2948_v21 = vpop.f32.mrf.mxu1  ;;  %v1272_v50 = vmax.f32 %v1228_v19, 0.0  ;;  %v1058_v31 = vadd.f32 %v2107_v51, %v961_v0 }
 0x14f   : > { %v1271_v23 = vmax.f32 %v1223_v34, 0.0  ;;  %v2158_v1 = vpop.f32.mrf.mxu0 }
 0x150   : > { %v1231_v38 = vadd.f32 %v2231_v53, %v1134_v17  ;;  %v2159_v39 = vadd.f32 %v2158_v1, %v2157_v16  ;;  %v1235_v42 = vpop.f32.mrf.mxu1  ;;  %v2174_v53 = vadd.f32 %v2924_v24, %v2922_v22  ;;  %v2116_v16 = vadd.f32 %v2916_v15, %v2912_v13  ;;  %v3193_v17 = vld [vmem:[#allocation2_spill] sm:$0xff]  ;;  %v3196_v13 = vld [vmem:[#allocation4_spill] sm:$0xff]  ;;  %v3197_v15 = vld [vmem:[#allocation5_spill] sm:$0xff] }
 0x151   : > { %v1284_v47 = vpack.c.bf16 %v1271_v23, %v1270_v33  ;;  %v2160_v41 = vpop.f32.mrf.mxu0  ;;  %v3194_v33 = vld [vmem:[#allocation3_spill] sm:$0xff]  ;;  %v1155_v10 = vadd.f32 %v2171_v8, %v1058_v31  ;;  %v3195_v1 = vld [vmem:[#allocation6_spill] sm:$0xff]  ;;  %v2177_v45 = vadd.f32 %v3197_v15, %v3196_v13 }
 0x152   : > { %v1273_v52 = vmax.f32 %v1231_v38, 0.0  ;;  %v1139_v9 = vadd.f32 %v2159_v39, %v2871_v46  ;;  %v2235_v43 = vpop.f32.mrf.mxu1  ;;  %v2104_v46 = vadd.f32 %v2884_v61, %v2878_v58  ;;  %v1158_v12 = vadd.f32 %v2174_v53, %v1061_v57 }
 0x153   : > { %2260 = vmatprep.mubr.bf16.mxu1 %v1284_v47  ;;  %v2161_v44 = vpop.f32.mrf.mxu0  ;;  %v2113_v7 = vadd.f32 %v3194_v33, %v3193_v17  ;;  %v2180_v35 = vadd.f32 %v2932_v40, %v3195_v1 }
 0x154   : > { %v2162_v27 = vadd.f32 %v2161_v44, %v2160_v41  ;;  %v1238_v36 = vpop.f32.mrf.mxu1  ;;  %v1285_v29 = vpack.c.bf16 %v1273_v52, %v1272_v50  ;;  %v1236_v49 = vadd.f32 %v1235_v42, %v1139_v9  ;;  %v1053_v24 = vadd.f32 %v2104_v46, %v956_v62 }
 0x155   : > { %v2163_v32 = vpop.f32.mrf.mxu0  ;;  %v1069_v42 = vadd.f32 %v2116_v16, %v972_v14 }
 0x156   : > { %v1142_v55 = vadd.f32 %v2162_v27, %v1045_v48  ;;  %v2238_v59 = vpop.f32.mrf.mxu1  ;;  %2261 = vmatmul.mubr.bf16.gmra.mxu1 %v1285_v29  ;;  %v1274_v28 = vmax.f32 %v1236_v49, 0.0  ;;  %v1969_v49 = vld [vmem:[%s3184_s4] ss:$0 sm:$0xff] }
 0x157   : > { %v2164_v54 = vpop.f32.mrf.mxu0  ;;  %v1166_v9 = vadd.f32 %v2180_v35, %v1069_v42 }
 0x158   : > { %v1239_v6 = vadd.f32 %v1238_v36, %v1142_v55  ;;  %v2165_v58 = vadd.f32 %v2164_v54, %v2163_v32  ;;  %v1251_v61 = vpop.f32.mrf.mxu1 }
 0x159   : > { %v2166_v30 = vpop.f32.mrf.mxu0  ;;  %v1252_v39 = vadd.f32 %v1251_v61, %v1155_v10 }
 0x15a   : > { %v1275_v63 = vmax.f32 %v1239_v6, 0.0  ;;  %v1147_v2 = vadd.f32 %v2165_v58, %v2882_v60  ;;  %v2239_v22 = vpop.f32.mrf.mxu1  ;;  %v969_v60 = vadd.f32 %v2049_v26, %v2824_v37 }
 0x15b   : > { %v2167_v34 = vpop.f32.mrf.mxu0  ;;  %v1278_v56 = vmax.f32 %v1252_v39, 0.0  ;;  %v1263_v44 = vadd.f32 %v2239_v22, %v1166_v9 }
 0x15c   : > { %v1286_v19 = vpack.c.bf16 %v1275_v63, %v1274_v28  ;;  %v2168_v18 = vadd.f32 %v2167_v34, %v2166_v30  ;;  %v1254_v20 = vpop.f32.mrf.mxu1  ;;  %v1244_v25 = vadd.f32 %v2948_v21, %v1147_v2  ;;  %v1066_v50 = vadd.f32 %v2113_v7, %v969_v60 }
 0x15d   : > { %v1255_v23 = vadd.f32 %v1254_v20, %v1158_v12  ;;  %v1281_v21 = vmax.f32 %v1263_v44, 0.0 }
 0x15e   : > { %v1150_v38 = vadd.f32 %v2168_v18, %v1053_v24  ;;  %2264 = vmatprep.mubr.bf16.mxu1 %v1286_v19  ;;  %v1276_v52 = vmax.f32 %v1244_v25, 0.0  ;;  %v1163_v37 = vadd.f32 %v2177_v45, %v1066_v50 }
 0x15f   : > { %v1279_v41 = vmax.f32 %v1255_v23, 0.0 }
 0x160   : > { %v1247_v47 = vadd.f32 %v2235_v43, %v1150_v38  ;;  %v1260_v27 = vadd.f32 %v2238_v59, %v1163_v37  ;;  %v2391_v43 = vld [vmem:[%s3185_s5 + $0x10] sm:$0xff]  }
 0x161   : > { %v1288_v40 = vpack.c.bf16 %v1279_v41, %v1278_v56  ;;  %2282 = vmatprep.subr.bf16.mxu0 %v2391_v43 }
 0x162   : > { %v1277_v11 = vmax.f32 %v1247_v47, 0.0  ;;  %v1280_v36 = vmax.f32 %v1260_v27, 0.0  ;;  %2283 = vmatpush3.bf16.msra.mxu0 %v2391_v43  ;;  %v1650_v27 = vlaneseq }
 0x163   : > { %2284 = vmatprep.subr.bf16.mxu0 %v2392_v3 }
 0x164   : > { %v1287_v48 = vpack.c.bf16 %v1277_v11, %v1276_v52  ;;  %v1289_v29 = vpack.c.bf16 %v1281_v21, %v1280_v36  ;;  %v3001_v21 = vand.u32 127, %v1650_v27  ;;  %v1978_v36 = vld [vmem:[%s3186_s6] ss:$0 sm:$0xff] }
 0x166   : > { %2265 = vmatmul.mubr.bf16.gmra.mxu1 %v1287_v48  ;;  %2285 = vmatpush3.bf16.msra.mxu0 %v2392_v3  ;;  %vm1652_vm1 = vcmp.lt.s32.totalorder %v3001_v21, 10 }
 0x167   : > { %2268 = vmatprep.mubr.bf16.mxu1 %v1288_v40  ;;  %2286 = vmatprep.subr.bf16.mxu0 %v2393_v5 }
 0x16a   : > { %2287 = vmatpush3.bf16.msra.mxu0 %v2393_v5 }
 0x16e   : > { %2269 = vmatmul.mubr.bf16.gmra.mxu1 %v1289_v29 }
 0x20c   : > { %v2258_v32 = vpop.f32.mrf.mxu1 }
 0x20d   : > { %v1404_v0 = vadd.f32 %v2258_v32, %v1969_v49 }
 0x20e   : > { %v1395_v46 = vpop.f32.mrf.mxu1 }
 0x20f   : > { %v1396_v59 = vadd.f32 %v1969_v49, %v1395_v46  ;;  %v1460_v58 = vmax.f32 %v1404_v0, 0.0 }
 0x210   : > { %v2259_v55 = vpop.f32.mrf.mxu1 }
 0x211   : > { %v1407_v62 = vadd.f32 %v2259_v55, %v1969_v49  ;;  %v1458_v4 = vmax.f32 %v1396_v59, 0.0 }
 0x212   : > { %v1398_v51 = vpop.f32.mrf.mxu1 }
 0x213   : > { %v1399_v53 = vadd.f32 %v1969_v49, %v1398_v51  ;;  %v1461_v54 = vmax.f32 %v1407_v62, 0.0 }
 0x215   : > { %v1459_v6 = vmax.f32 %v1399_v53, 0.0  ;;  %v1475_v8 = vpack.c.bf16 %v1461_v54, %v1460_v58 }
 0x216   : > { %v2262_v61 = vpop.f32.mrf.mxu1 }
 0x217   : > { %v1474_v57 = vpack.c.bf16 %v1459_v6, %v1458_v4  ;;  %v1420_v2 = vadd.f32 %v2262_v61, %v1969_v49 }
 0x218   : > { %v1411_v30 = vpop.f32.mrf.mxu1 }
 0x219   : > { %2288 = vmatprep.mubr.bf16.mxu0 %v1474_v57  ;;  %v1412_v28 = vadd.f32 %v1969_v49, %v1411_v30  ;;  %v1464_v14 = vmax.f32 %v1420_v2, 0.0 }
 0x21a   : > { %2289 = vmatmul.mubr.bf16.vlgmr.msra.gmra.mxu0 %v1475_v8  ;;  %v2263_v26 = vpop.f32.mrf.mxu1 }
 0x21b   : > { %v1423_v63 = vadd.f32 %v2263_v26, %v1969_v49  ;;  %v1462_v34 = vmax.f32 %v1412_v28, 0.0 }
 0x21c   : > { %v1414_v22 = vpop.f32.mrf.mxu1 }
 0x21d   : > { %v1415_v24 = vadd.f32 %v1969_v49, %v1414_v22  ;;  %v1465_v31 = vmax.f32 %v1423_v63, 0.0 }
 0x21f   : > { %v1463_v12 = vmax.f32 %v1415_v24, 0.0  ;;  %v1477_v19 = vpack.c.bf16 %v1465_v31, %v1464_v14 }
 0x221   : > { %v1476_v16 = vpack.c.bf16 %v1463_v12, %v1462_v34 }
 0x223   : > { %2292 = vmatprep.mubr.bf16.mxu0 %v1476_v16 }
 0x224   : > { %2293 = vmatmul.mubr.bf16.gmra.mxu0 %v1477_v19 }
 0x226   : > { %v2266_v18 = vpop.f32.mrf.mxu1 }
 0x227   : > { %v1436_v10 = vadd.f32 %v2266_v18, %v1969_v49 }
 0x228   : > { %v1427_v20 = vpop.f32.mrf.mxu1 }
 0x229   : > { %v1428_v33 = vadd.f32 %v1969_v49, %v1427_v20  ;;  %v1468_v39 = vmax.f32 %v1436_v10, 0.0 }
 0x22a   : > { %v2267_v17 = vpop.f32.mrf.mxu1 }
 0x22b   : > { %v1439_v7 = vadd.f32 %v2267_v17, %v1969_v49  ;;  %v1466_v25 = vmax.f32 %v1428_v33, 0.0 }
 0x22c   : > { %v1430_v23 = vpop.f32.mrf.mxu1 }
 0x22d   : > { %v1431_v60 = vadd.f32 %v1969_v49, %v1430_v23  ;;  %v1469_v1 = vmax.f32 %v1439_v7, 0.0 }
 0x22e   : > { %v2270_v35 = vpop.f32.mrf.mxu1 }
 0x22f   : > { %v1467_v38 = vmax.f32 %v1431_v60, 0.0  ;;  %v1479_v15 = vpack.c.bf16 %v1469_v1, %v1468_v39  ;;  %v1452_v50 = vadd.f32 %v2270_v35, %v1969_v49 }
 0x230   : > { %v1443_v42 = vpop.f32.mrf.mxu1 }
 0x231   : > { %v1478_v13 = vpack.c.bf16 %v1467_v38, %v1466_v25  ;;  %v1444_v47 = vadd.f32 %v1969_v49, %v1443_v42  ;;  %v1472_v44 = vmax.f32 %v1452_v50, 0.0 }
 0x232   : > { %v2271_v45 = vpop.f32.mrf.mxu1 }
 0x233   : > { %v1455_v41 = vadd.f32 %v2271_v45, %v1969_v49  ;;  %2296 = vmatprep.mubr.bf16.mxu0 %v1478_v13  ;;  %v1470_v56 = vmax.f32 %v1444_v47, 0.0 }
 0x234   : > { %v1446_v52 = vpop.f32.mrf.mxu1  ;;  %2297 = vmatmul.mubr.bf16.gmra.mxu0 %v1479_v15 }
 0x235   : > { %v1447_v9 = vadd.f32 %v1969_v49, %v1446_v52  ;;  %v1473_v11 = vmax.f32 %v1455_v41, 0.0 }
 0x237   : > { %v1471_v37 = vmax.f32 %v1447_v9, 0.0  ;;  %v1481_v40 = vpack.c.bf16 %v1473_v11, %v1472_v44 }
 0x239   : > { %v1480_v48 = vpack.c.bf16 %v1471_v37, %v1470_v56 }
 0x23b   : > { %2300 = vmatprep.mubr.bf16.mxu0 %v1480_v48 }
 0x23c   : > { %2301 = vmatmul.mubr.bf16.gmra.mxu0 %v1481_v40 }
 0x2da   : > { %v2290_v29 = vpop.f32.mrf.mxu0 }
 0x2db   : > { %v1596_v43 = vadd.f32 %v2290_v29, %v1978_v36 }
 0x2dc   : > { %v1587_v3 = vpop.f32.mrf.mxu0 }
 0x2dd   : > { %v1588_v5 = vadd.f32 %v1978_v36, %v1587_v3  ;;  %v1655_v32 = vsel %vm1652_vm1, %v1596_v43, -1e+30 }
 0x2de   : > { %1673 = vmax.xlane.f32.xlu1 %v1655_v32  ;;  %v2291_v46 = vpop.f32.mrf.mxu0 }
 0x2df   : > { %v1599_v49 = vadd.f32 %v2291_v46, %v1978_v36  ;;  %v1653_v55 = vsel %vm1652_vm1, %v1588_v5, -1e+30 }
 0x2e0   : > { %v1590_v59 = vpop.f32.mrf.mxu0  ;;  %1669 = vmax.xlane.f32.xlu0 %v1653_v55 }
 0x2e1   : > { %v1591_v62 = vadd.f32 %v1978_v36, %v1590_v59  ;;  %v1656_v0 = vsel %vm1652_vm1, %v1599_v49, -1e+30 }
 0x2e2   : > { %1675 = vmax.xlane.f32.xlu1 %v1656_v0 }
 0x2e3   : > { %v1654_v51 = vsel %vm1652_vm1, %v1591_v62, -1e+30 }
 0x2e4   : > { %1671 = vmax.xlane.f32.xlu0 %v1654_v51  ;;  %v2294_v53 = vpop.f32.mrf.mxu0 }
 0x2e5   : > { %v1612_v54 = vadd.f32 %v2294_v53, %v1978_v36 }
 0x2e6   : > { %v1603_v4 = vpop.f32.mrf.mxu0 }
 0x2e7   : > { %v1604_v6 = vadd.f32 %v1978_v36, %v1603_v4  ;;  %v1659_v58 = vsel %vm1652_vm1, %v1612_v54, -1e+30 }
 0x2e8   : > { %v2295_v61 = vpop.f32.mrf.mxu0  ;;  %1681 = vmax.xlane.f32.xlu0 %v1659_v58 }
 0x2e9   : > { %v1615_v57 = vadd.f32 %v2295_v61, %v1978_v36  ;;  %v1657_v28 = vsel %vm1652_vm1, %v1604_v6, -1e+30 }
 0x2ea   : > { %v1606_v8 = vpop.f32.mrf.mxu0 }
 0x2eb   : > { %v1607_v30 = vadd.f32 %v1978_v36, %v1606_v8  ;;  %v1660_v26 = vsel %vm1652_vm1, %v1615_v57, -1e+30 }
 0x2ec   : > { %1683 = vmax.xlane.f32.xlu1 %v1660_v26  ;;  %1677 = vmax.xlane.f32.xlu0 %v1657_v28 }
 0x2ed   : > { %v3023_v63 = vsel %vm1652_vm1, %v1607_v30, -1e+30 }
 0x2f0   : > { %1679 = vmax.xlane.f32.xlu1 %v3023_v63 }
 0x2f4   : > { %v2298_v2 = vpop.f32.mrf.mxu0 }
 0x2f5   : > { %v1628_v22 = vadd.f32 %v2298_v2, %v1978_v36 }
 0x2f6   : > { %v1619_v24 = vpop.f32.mrf.mxu0 }
 0x2f7   : > { %v1620_v31 = vadd.f32 %v1978_v36, %v1619_v24  ;;  %v3028_v34 = vsel %vm1652_vm1, %v1628_v22, -1e+30 }
 0x2f8   : > { %v2299_v12 = vpop.f32.mrf.mxu0  ;;  %1689 = vmax.xlane.f32.xlu0 %v3028_v34 }
 0x2f9   : > { %v1631_v14 = vadd.f32 %v2299_v12, %v1978_v36  ;;  %v3037_v20 = vsel %vm1652_vm1, %v1620_v31, -1e+30 }
 0x2fa   : > { %v1622_v16 = vpop.f32.mrf.mxu0 }
 0x2fb   : > { %v1623_v19 = vadd.f32 %v1978_v36, %v1622_v16  ;;  %v3033_v18 = vsel %vm1652_vm1, %v1631_v14, -1e+30 }
 0x2fc   : > { %v2302_v17 = vpop.f32.mrf.mxu0  ;;  %1691 = vmax.xlane.f32.xlu1 %v3033_v18  ;;  %1685 = vmax.xlane.f32.xlu0 %v3037_v20 }
 0x2fd   : > { %v3043_v10 = vsel %vm1652_vm1, %v1623_v19, -1e+30  ;;  %v1644_v60 = vadd.f32 %v2302_v17, %v1978_v36 }
 0x2fe   : > { %v1635_v33 = vpop.f32.mrf.mxu0 }
 0x2ff   : > { %v1636_v7 = vadd.f32 %v1978_v36, %v1635_v33  ;;  %v3057_v42 = vsel %vm1652_vm1, %v1644_v60, -1e+30 }
 0x300   : > { %v2303_v23 = vpop.f32.mrf.mxu0  ;;  %1687 = vmax.xlane.f32.xlu1 %v3043_v10 }
 0x301   : > { %v3048_v1 = vsel %vm1652_vm1, %v1636_v7, -1e+30  ;;  %v1647_v38 = vadd.f32 %v2303_v23, %v1978_v36 }
 0x302   : > { %v1638_v35 = vpop.f32.mrf.mxu0  ;;  %1693 = vmax.xlane.f32.xlu0 %v3048_v1 }
 0x303   : > { %v1639_v25 = vadd.f32 %v1978_v36, %v1638_v35  ;;  %v3063_v13 = vsel %vm1652_vm1, %v1647_v38, -1e+30 }
 0x305   : > { %v3053_v39 = vsel %vm1652_vm1, %v1639_v25, -1e+30 }
 0x306   : > { %1695 = vmax.xlane.f32.xlu1 %v3053_v39  ;;  %1697 = vmax.xlane.f32.xlu0 %v3057_v42 }
 0x30a   : > { %1699 = vmax.xlane.f32.xlu1 %v3063_v13 }
 0x367   : > { %v1674_v15 = vpop.xlane.xlu1 %1673 }
 0x368   : > { %v3066_v45 = vsub.f32 %v1655_v32, %v1674_v15 }
 0x369   : > { %v1670_v47 = vpop.xlane.xlu0 %1669 }
 0x36a   : > { %v1721_v41 = vmul.f32 1.442695, %v3066_v45  ;;  %v3069_v50 = vsub.f32 %v1653_v55, %v1670_v47 }
 0x36b   : > { %v1676_v52 = vpop.xlane.xlu1 %1675 }
 0x36c   : > { %2394 = vpow2.f32 %v1721_v41  ;;  %v1717_v9 = vmul.f32 1.442695, %v3069_v50  ;;  %v3072_v11 = vsub.f32 %v1656_v0, %v1676_v52 }
 0x36d   : > { %v1672_v56 = vpop.xlane.xlu0 %1671 }
 0x36e   : > { %v1723_v37 = vmul.f32 1.442695, %v3072_v11  ;;  %v3075_v44 = vsub.f32 %v1654_v51, %v1672_v56  ;;  %2396 = vpow2.f32 %v1717_v9 }
 0x370   : > { %2398 = vpow2.f32 %v1723_v37  ;;  %v1719_v48 = vmul.f32 1.442695, %v3075_v44 }
 0x371   : > { %v1682_v40 = vpop.xlane.xlu0 %1681 }
 0x372   : > { %v3078_v27 = vsub.f32 %v1659_v58, %v1682_v40  ;;  %2400 = vpow2.f32 %v1719_v48 }
 0x374   : > { %v1729_v21 = vmul.f32 1.442695, %v3078_v27 }
 0x375   : > { %v1684_v36 = vpop.xlane.xlu1 %1683  ;;  %v1678_v29 = vpop.xlane.xlu0 %1677 }
 0x376   : > { %2402 = vpow2.f32 %v1729_v21  ;;  %v3081_v43 = vsub.f32 %v1660_v26, %v1684_v36  ;;  %v3083_v3 = vsub.f32 %v1657_v28, %v1678_v29 }
 0x378   : > { %v1731_v5 = vmul.f32 1.442695, %v3081_v43  ;;  %v1725_v32 = vmul.f32 1.442695, %v3083_v3 }
 0x379   : > { %v2395_v46 = vpop.eup %2394  ;;  %v1680_v49 = vpop.xlane.xlu1 %1679 }
 0x37a   : > { %2404 = vpow2.f32 %v1731_v5  ;;  %v3088_v55 = vsub.f32 %v3023_v63, %v1680_v49  ;;  %1753 = vadd.xlane.f32.xlu0 %v2395_v46 }
 0x37b   : > { %2406 = vpow2.f32 %v1725_v32  ;;  %v2397_v59 = vpop.eup %2396 }
 0x37c   : > { %v1727_v62 = vmul.f32 1.442695, %v3088_v55 }
 0x37d   : > { %v2399_v0 = vpop.eup %2398 }
 0x37e   : > { %2408 = vpow2.f32 %v1727_v62  ;;  %1755 = vadd.xlane.f32.xlu1 %v2399_v0  ;;  %1749 = vadd.xlane.f32.xlu0 %v2397_v59 }
 0x37f   : > { %v2401_v51 = vpop.eup %2400 }
 0x381   : > { %v1690_v53 = vpop.xlane.xlu0 %1689 }
 0x382   : > { %1751 = vadd.xlane.f32.xlu1 %v2401_v51  ;;  %v3092_v54 = vsub.f32 %v3028_v34, %v1690_v53 }
 0x383   : > { %v2403_v4 = vpop.eup %2402 }
 0x384   : > { %v1737_v6 = vmul.f32 1.442695, %v3092_v54  ;;  %1761 = vadd.xlane.f32.xlu0 %v2403_v4 }
 0x385   : > { %v1692_v58 = vpop.xlane.xlu1 %1691  ;;  %v1686_v61 = vpop.xlane.xlu0 %1685 }
 0x386   : > { %2410 = vpow2.f32 %v1737_v6  ;;  %v3096_v57 = vsub.f32 %v3033_v18, %v1692_v58  ;;  %v3099_v8 = vsub.f32 %v3037_v20, %v1686_v61 }
 0x387   : > { %v2405_v30 = vpop.eup %2404 }
 0x388   : > { %v2407_v26 = vpop.eup %2406  ;;  %v1739_v28 = vmul.f32 1.442695, %v3096_v57  ;;  %v1733_v63 = vmul.f32 1.442695, %v3099_v8  ;;  %1763 = vadd.xlane.f32.xlu1 %v2405_v30 }
 0x389   : > { %1757 = vadd.xlane.f32.xlu0 %v2407_v26  ;;  %v1688_v2 = vpop.xlane.xlu1 %1687 }
 0x38a   : > { %2412 = vpow2.f32 %v1739_v28  ;;  %v3104_v22 = vsub.f32 %v3043_v10, %v1688_v2 }
 0x38b   : > { %v2409_v24 = vpop.eup %2408  ;;  %2414 = vpow2.f32 %v1733_v63  ;;  %v1694_v31 = vpop.xlane.xlu0 %1693 }
 0x38c   : > { %v1735_v34 = vmul.f32 1.442695, %v3104_v22  ;;  %v3108_v12 = vsub.f32 %v3048_v1, %v1694_v31  ;;  %1759 = vadd.xlane.f32.xlu1 %v2409_v24 }
 0x38e   : > { %2416 = vpow2.f32 %v1735_v34  ;;  %v1741_v14 = vmul.f32 1.442695, %v3108_v12 }
 0x38f   : > { %v1696_v16 = vpop.xlane.xlu1 %1695  ;;  %v1698_v19 = vpop.xlane.xlu0 %1697 }
 0x390   : > { %2418 = vpow2.f32 %v1741_v14  ;;  %v3112_v18 = vsub.f32 %v3053_v39, %v1696_v16  ;;  %v3115_v20 = vsub.f32 %v3057_v42, %v1698_v19 }
 0x392   : > { %v1743_v17 = vmul.f32 1.442695, %v3112_v18  ;;  %v1745_v33 = vmul.f32 1.442695, %v3115_v20 }
 0x393   : > { %v2411_v7 = vpop.eup %2410  ;;  %v1700_v10 = vpop.xlane.xlu1 %1699 }
 0x394   : > { %2420 = vpow2.f32 %v1743_v17  ;;  %v3120_v23 = vsub.f32 %v3063_v13, %v1700_v10  ;;  %1769 = vadd.xlane.f32.xlu0 %v2411_v7 }
 0x395   : > { %2422 = vpow2.f32 %v1745_v33 }
 0x396   : > { %v1747_v60 = vmul.f32 1.442695, %v3120_v23 }
 0x397   : > { %v2413_v1 = vpop.eup %2412 }
 0x398   : > { %v2415_v35 = vpop.eup %2414  ;;  %2424 = vpow2.f32 %v1747_v60  ;;  %1771 = vadd.xlane.f32.xlu1 %v2413_v1 }
 0x399   : > { %1765 = vadd.xlane.f32.xlu0 %v2415_v35 }
 0x39b   : > { %v2417_v25 = vpop.eup %2416 }
 0x39c   : > { %1767 = vadd.xlane.f32.xlu1 %v2417_v25 }
 0x39d   : > { %v2419_v38 = vpop.eup %2418 }
 0x39e   : > { %1773 = vadd.xlane.f32.xlu0 %v2419_v38 }
 0x3a1   : > { %v2421_v39 = vpop.eup %2420 }
 0x3a2   : > { %v2423_v42 = vpop.eup %2422  ;;  %1775 = vadd.xlane.f32.xlu1 %v2421_v39 }
 0x3a3   : > { %1777 = vadd.xlane.f32.xlu0 %v2423_v42 }
 0x3a5   : > { %v2425_v13 = vpop.eup %2424 }
 0x3a6   : > { %1779 = vadd.xlane.f32.xlu1 %v2425_v13 }
 0x403   : > { %v1754_v15 = vpop.xlane.xlu0 %1753 }
 0x404   : > { %2426 = vlog2.f32 %v1754_v15 }
 0x407   : > { %v1756_v47 = vpop.xlane.xlu1 %1755  ;;  %v1750_v41 = vpop.xlane.xlu0 %1749 }
 0x408   : > { %2428 = vlog2.f32 %v1756_v47 }
 0x409   : > { %2430 = vlog2.f32 %v1750_v41 }
 0x40b   : > { %v1752_v52 = vpop.xlane.xlu1 %1751 }
 0x40c   : > { %2432 = vlog2.f32 %v1752_v52 }
 0x40d   : > { %v1762_v9 = vpop.xlane.xlu0 %1761 }
 0x40e   : > { %2434 = vlog2.f32 %v1762_v9 }
 0x411   : > { %v2427_v56 = vpop.eup %2426  ;;  %v1764_v37 = vpop.xlane.xlu1 %1763 }
 0x412   : > { %v1786_v48 = vmul.f32 0.6931472, %v2427_v56  ;;  %2436 = vlog2.f32 %v1764_v37  ;;  %v1758_v40 = vpop.xlane.xlu0 %1757 }
 0x413   : > { %2438 = vlog2.f32 %v1758_v40 }
 0x414   : > { %v1815_v21 = vsub.f32 %v3066_v45, %v1786_v48 }
 0x415   : > { %v2429_v36 = vpop.eup %2428  ;;  %v1760_v29 = vpop.xlane.xlu1 %1759 }
 0x416   : > { %v2431_v5 = vpop.eup %2430  ;;  %1832 = vst.msk [vmem:[%s3127_s21 + $0x10] sm:$0xff] %vm1829_vm2, %v1815_v21  ;;  %v1788_v32 = vmul.f32 0.6931472, %v2429_v36  ;;  %2440 = vlog2.f32 %v1760_v29 }
 0x417   : > { %v1782_v46 = vmul.f32 0.6931472, %v2431_v5 }
 0x418   : > { %v1816_v49 = vsub.f32 %v3072_v11, %v1788_v32 }
 0x419   : > { %v2433_v59 = vpop.eup %2432  ;;  %v1813_v62 = vsub.f32 %v3069_v50, %v1782_v46 }
 0x41a   : > { %1833 = vst.msk [vmem:[%s3127_s21 + $0x18] sm:$0xff] %vm1829_vm2, %v1816_v49  ;;  %v1784_v0 = vmul.f32 0.6931472, %v2433_v59 }
 0x41b   : > { %v2435_v51 = vpop.eup %2434  ;;  %1830 = vst.msk [vmem:[%s3127_s21] sm:$0xff] %vm1829_vm2, %v1813_v62 }
 0x41c   : > { %v1814_v45 = vsub.f32 %v3075_v44, %v1784_v0  ;;  %v1794_v53 = vmul.f32 0.6931472, %v2435_v51 }
 0x41d   : > { %v1770_v4 = vpop.xlane.xlu0 %1769 }
 0x41e   : > { %1831 = vst.msk [vmem:[%s3127_s21 + $0x8] sm:$0xff] %vm1829_vm2, %v1814_v45  ;;  %v1819_v6 = vsub.f32 %v3078_v27, %v1794_v53  ;;  %2442 = vlog2.f32 %v1770_v4 }
 0x41f   : > { %v2437_v11 = vpop.eup %2436 }
 0x420   : > { %v2439_v58 = vpop.eup %2438  ;;  %1836 = vst.msk [vmem:[%s3127_s21 + $0x30] sm:$0xff] %vm1829_vm2, %v1819_v6  ;;  %v1796_v50 = vmul.f32 0.6931472, %v2437_v11 }
 0x421   : > { %v1790_v61 = vmul.f32 0.6931472, %v2439_v58  ;;  %v1772_v30 = vpop.xlane.xlu1 %1771 }
 0x422   : > { %v1820_v26 = vsub.f32 %v3081_v43, %v1796_v50  ;;  %2444 = vlog2.f32 %v1772_v30  ;;  %v1766_v44 = vpop.xlane.xlu0 %1765 }
 0x423   : > { %v2441_v28 = vpop.eup %2440  ;;  %v1817_v63 = vsub.f32 %v3083_v3, %v1790_v61  ;;  %2446 = vlog2.f32 %v1766_v44 }
 0x424   : > { %1837 = vst.msk [vmem:[%s3127_s21 + $0x38] sm:$0xff] %vm1829_vm2, %v1820_v26  ;;  %v1792_v27 = vmul.f32 0.6931472, %v2441_v28 }
 0x425   : > { %1834 = vst.msk [vmem:[%s3127_s21 + $0x20] sm:$0xff] %vm1829_vm2, %v1817_v63  ;;  %v1768_v2 = vpop.xlane.xlu1 %1767 }
 0x426   : > { %v1818_v24 = vsub.f32 %v3088_v55, %v1792_v27  ;;  %2448 = vlog2.f32 %v1768_v2 }
 0x427   : > { %v1774_v31 = vpop.xlane.xlu0 %1773 }
 0x428   : > { %1835 = vst.msk [vmem:[%s3127_s21 + $0x28] sm:$0xff] %vm1829_vm2, %v1818_v24  ;;  %2450 = vlog2.f32 %v1774_v31 }
 0x42b   : > { %v2443_v43 = vpop.eup %2442  ;;  %v1776_v34 = vpop.xlane.xlu1 %1775 }
 0x42c   : > { %v1802_v14 = vmul.f32 0.6931472, %v2443_v43  ;;  %2452 = vlog2.f32 %v1776_v34  ;;  %v1778_v3 = vpop.xlane.xlu0 %1777 }
 0x42d   : > { %2454 = vlog2.f32 %v1778_v3 }
 0x42e   : > { %v1823_v16 = vsub.f32 %v3092_v54, %v1802_v14 }
 0x42f   : > { %v2445_v19 = vpop.eup %2444  ;;  %v1780_v17 = vpop.xlane.xlu1 %1779 }
 0x430   : > { %v2447_v33 = vpop.eup %2446  ;;  %1840 = vst.msk [vmem:[%s3127_s21 + $0x50] sm:$0xff] %vm1829_vm2, %v1823_v16  ;;  %v1804_v55 = vmul.f32 0.6931472, %v2445_v19  ;;  %2456 = vlog2.f32 %v1780_v17 }
 0x431   : > { %v1798_v7 = vmul.f32 0.6931472, %v2447_v33 }
 0x432   : > { %v1824_v10 = vsub.f32 %v3096_v57, %v1804_v55 }
 0x433   : > { %v2449_v60 = vpop.eup %2448  ;;  %v1821_v1 = vsub.f32 %v3099_v8, %v1798_v7 }
 0x434   : > { %1841 = vst.msk [vmem:[%s3127_s21 + $0x58] sm:$0xff] %vm1829_vm2, %v1824_v10  ;;  %v1800_v35 = vmul.f32 0.6931472, %v2449_v60 }
 0x435   : > { %v2451_v54 = vpop.eup %2450  ;;  %1838 = vst.msk [vmem:[%s3127_s21 + $0x40] sm:$0xff] %vm1829_vm2, %v1821_v1 }
 0x436   : > { %v1822_v25 = vsub.f32 %v3104_v22, %v1800_v35  ;;  %v1806_v38 = vmul.f32 0.6931472, %v2451_v54 }
 0x438   : > { %1839 = vst.msk [vmem:[%s3127_s21 + $0x48] sm:$0xff] %vm1829_vm2, %v1822_v25  ;;  %v1825_v39 = vsub.f32 %v3108_v12, %v1806_v38 }
 0x439   : > { %v2453_v57 = vpop.eup %2452 }
 0x43a   : > { %v2455_v42 = vpop.eup %2454  ;;  %1842 = vst.msk [vmem:[%s3127_s21 + $0x60] sm:$0xff] %vm1829_vm2, %v1825_v39  ;;  %v1808_v8 = vmul.f32 0.6931472, %v2453_v57 }
 0x43b   : > { %v1810_v13 = vmul.f32 0.6931472, %v2455_v42 }
 0x43c   : > { %v1826_v15 = vsub.f32 %v3112_v18, %v1808_v8 }
 0x43d   : > { %v2457_v47 = vpop.eup %2456  ;;  %v1827_v41 = vsub.f32 %v3115_v20, %v1810_v13 }
 0x43e   : > { %1843 = vst.msk [vmem:[%s3127_s21 + $0x68] sm:$0xff] %vm1829_vm2, %v1826_v15  ;;  %v1812_v22 = vmul.f32 0.6931472, %v2457_v47 }
 0x43f   : > { %1844 = vst.msk [vmem:[%s3127_s21 + $0x70] sm:$0xff] %vm1829_vm2, %v1827_v41 }
 0x440   : > { %v1828_v52 = vsub.f32 %v3120_v23, %v1812_v22 }
 0x442   : > { %1845 = vst.msk [vmem:[%s3127_s21 + $0x78] sm:$0xff] %vm1829_vm2, %v1828_v52 }
 0x443 PF: > { %s17_s24 = sadd.s32 1, %s2464_s24  }
 0x444   : > { %p14_p4 = scmp.ge.s32.totalorder %s17_s24, 4  }
 0x446   :  { %16 = sbr.rel (!%p14_p4) target bundleno = 1 (0x1), region = 78 }

</bundles_post_ra>
